<compile_context>
chip_gen: v5e
topology: v5e:2x2
jax: 0.10.0
libtpu: 0.0.40
codegen_flags: <defaults>
</compile_context>

<pallas_src>
import functools
import math

import jax
import jax.numpy as jnp
from jax import lax
from jax.experimental import pallas as pl
from jax.experimental.pallas import tpu as pltpu

_BN_EPS = 1e-5
_TILE_N = 4096                      # lane tile over the flattened padded grid
_SUBLANE = 8
_LANE = 128
_VMEM_LIMIT = 32 * 1024 * 1024      # explicit scoped-VMEM budget (v7x: 64 MiB phys)


def _round_up(x, m):
    return (x + m - 1) // m * m


def _sublane(dtype):
    # native sublane tile: 8 rows for 4-byte, 16 rows for 2-byte dtypes
    return _SUBLANE * 4 // jnp.dtype(dtype).itemsize


def _input_spec(block_shape, index_map, buffer_count=None):
    """BlockSpec, optionally with deeper multi-buffering if this JAX supports it."""
    if buffer_count is not None and hasattr(pl, "Buffered"):
        try:
            return pl.BlockSpec(block_shape, index_map,
                                pipeline_mode=pl.Buffered(buffer_count))
        except TypeError:           # older BlockSpec without pipeline_mode
            pass
    return pl.BlockSpec(block_shape, index_map)


# ----------------------------- Pallas kernels --------------------------------
def _conv_stats_kernel(w_ref, x_ref, mask_ref, raw_ref, sum_ref, ssq_ref, *,
                       cin_p, tile, wp):
    """Pass A: 3x3 conv of one lane tile + per-tile BN partial statistics.

    w_ref   : (9, Cp, Cin_p)        tap weights (full block, DMA'd once per call)
    x_ref   : (Cin_p, tile + halo)  contiguous window of the flattened padded slab
    mask_ref: (1, tile)             1.0 at real output positions, 0.0 elsewhere
    raw_ref : (Cp, tile)            raw conv output tile (compute dtype)
    sum_ref : (Cp, 1)  ssq_ref: (Cp, 1)  per-tile masked partial sums (f32)
    """
    xw = x_ref[...]
    mask = mask_ref[...].astype(jnp.float32)                     # (1, tile)
    cp = raw_ref.shape[0]
    acc = jnp.zeros((cp, tile), jnp.float32)
    # In-VMEM im2col: each tap is a static lane shift of the same window.
    for r in range(9):
        ky, kx = divmod(r, 3)
        off = ky * wp + kx
        win = lax.slice(xw, (0, off), (cin_p, off + tile))        # (Cin_p, tile)
        acc = acc + jnp.dot(w_ref[r], win, preferred_element_type=jnp.float32)
    acc = acc * mask                       # zero pad/garbage columns (stats + store)
    raw_ref[...] = acc.astype(raw_ref.dtype)
    sum_ref[...] = jnp.sum(acc, axis=1, keepdims=True)
    ssq_ref[...] = jnp.sum(acc * acc, axis=1, keepdims=True)


def _bn_relu_kernel(scale_ref, shift_ref, raw_ref, out_ref):
    """Pass B: per-channel affine (folded BN) + ReLU; f32 math, cast at the store."""
    x = raw_ref[...].astype(jnp.float32)
    out_ref[...] = jnp.maximum(x * scale_ref[...] + shift_ref[...], 0.0
                               ).astype(out_ref.dtype)


# ------------------------- conv + BN + ReLU wrapper ---------------------------
def conv3x3_bn_relu(xpad, w_oihw, gamma, beta, *, compute_dtype, out_dtype):
    """relu(batchnorm(conv3x3_valid(xpad, w))), training-mode batch statistics.

    xpad  : (Cin, B, Hp, Wp) spatially pre-padded slab (valid conv -> Hp-2, Wp-2)
    w_oihw: (Cout, Cin, 3, 3)
    Returns (Cout, B, Hp-2, Wp-2) in out_dtype.
    """
    cin, b, hp, wp = xpad.shape
    cout = w_oihw.shape[0]
    ho, wo = hp - 2, wp - 2

    sub = _sublane(compute_dtype)
    cp = _round_up(cout, sub)
    cinp = _round_up(cin, sub)
    cdt = jnp.dtype(compute_dtype)

    nfull = b * hp * wp                         # flattened *padded* grid
    n_valid = b * ho * wo                       # real output positions (BN count)
    tile = min(_TILE_N, _round_up(nfull, _LANE))
    ntiles = (nfull + tile - 1) // tile
    npad = ntiles * tile
    halo = 2 * wp + 2                           # largest tap shift
    hpad = _round_up(halo, _LANE)
    wblk = tile + hpad

    # tap weights as (9, Cp, Cin_p): w9[ky*3+kx, co, ci] = w[co, ci, ky, kx]
    w9 = jnp.transpose(w_oihw, (2, 3, 0, 1)).reshape(9, cout, cin)
    w9 = jnp.pad(w9, ((0, 0), (0, cp - cout), (0, cinp - cin))).astype(compute_dtype)

    # flattened slab + per-tile halo windows, laid out (ntiles*Cin_p, tile+halo)
    xflat = jnp.pad(xpad.reshape(cin, nfull).astype(compute_dtype),
                    ((0, cinp - cin), (0, npad + hpad - nfull)))
    xtiles = jnp.concatenate(
        [lax.slice_in_dim(xflat, t * tile, t * tile + wblk, axis=1)
         for t in range(ntiles)], axis=0)

    # validity mask over the padded grid: garbage columns read into the spatial
    # pad of the next row/batch; they are discarded but must not pollute BN stats.
    mask = jnp.zeros((b, hp, wp), jnp.float32).at[:, :ho, :wo].set(1.0)
    mask = jnp.pad(mask.reshape(1, nfull), ((0, 0), (0, npad - nfull)))

    kern = functools.partial(_conv_stats_kernel, cin_p=cinp, tile=tile, wp=wp)
    raw, s1, s2 = pl.pallas_call(
        kern,
        grid=(ntiles,),
        in_specs=[
            pl.BlockSpec((9, cp, cinp), lambda t: (0, 0, 0)),
            _input_spec((cinp, wblk), lambda t: (t, 0),
                        buffer_count=3 if ntiles >= 3 else None),
            pl.BlockSpec((1, tile), lambda t: (0, t)),
        ],
        out_specs=[
            pl.BlockSpec((cp, tile), lambda t: (0, t)),
            pl.BlockSpec((cp, 1), lambda t: (t, 0)),
            pl.BlockSpec((cp, 1), lambda t: (t, 0)),
        ],
        out_shape=[
            jax.ShapeDtypeStruct((cp, npad), compute_dtype),
            jax.ShapeDtypeStruct((ntiles * cp, 1), jnp.float32),
            jax.ShapeDtypeStruct((ntiles * cp, 1), jnp.float32),
        ],
        compiler_params=pltpu.CompilerParams(
            dimension_semantics=("parallel",),     # per-tile partial stats ->
            vmem_limit_bytes=_VMEM_LIMIT),         # megacore-shardable pass A
        cost_estimate=pl.CostEstimate(
            flops=int(2 * cp * 9 * cinp * npad),
            transcendentals=0,
            bytes_accessed=int(9 * cp * cinp * cdt.itemsize
                               + ntiles * cinp * wblk * cdt.itemsize
                               + npad * 4
                               + cp * npad * cdt.itemsize
                               + 2 * ntiles * cp * 4)),
    )(w9, xtiles, mask)

    # finalize statistics (tiny) and fold the BN affine on the host.
    # NOTE: E[x^2]-E[x]^2 in f32; fine at these sizes -- switch to Chan/Welford
    #       per-tile combination if N or activation offsets grow large.
    s1 = jnp.sum(s1.reshape(ntiles, cp, 1), axis=0)
    s2 = jnp.sum(s2.reshape(ntiles, cp, 1), axis=0)
    inv_n = 1.0 / float(n_valid)
    mean = s1 * inv_n
    var = jnp.maximum(s2 * inv_n - mean * mean, 0.0)
    g = jnp.pad(gamma.reshape(-1).astype(jnp.float32), (0, cp - cout)).reshape(cp, 1)
    bt = jnp.pad(beta.reshape(-1).astype(jnp.float32), (0, cp - cout)).reshape(cp, 1)
    scale = g * lax.rsqrt(var + _BN_EPS)
    shift = bt - mean * scale

    out = pl.pallas_call(
        _bn_relu_kernel,
        grid=(ntiles,),
        in_specs=[
            pl.BlockSpec((cp, 1), lambda t: (0, 0)),
            pl.BlockSpec((cp, 1), lambda t: (0, 0)),
            pl.BlockSpec((cp, tile), lambda t: (0, t)),
        ],
        out_specs=pl.BlockSpec((cp, tile), lambda t: (0, t)),
        out_shape=jax.ShapeDtypeStruct((cp, npad), out_dtype),
        compiler_params=pltpu.CompilerParams(
            dimension_semantics=("parallel",), vmem_limit_bytes=_VMEM_LIMIT),
        cost_estimate=pl.CostEstimate(
            flops=int(2 * cp * npad),
            transcendentals=0,
            bytes_accessed=int(cp * npad * (cdt.itemsize
                                            + jnp.dtype(out_dtype).itemsize)
                               + 8 * cp)),
    )(scale, shift, raw)

    # drop pad/garbage columns and restore (Cout, B, Ho, Wo)
    return out[:cout, :nfull].reshape(cout, b, hp, wp)[:, :, :ho, :wo]


# ------------------------------- JAX glue ------------------------------------
def _dilate_and_pad_cbhw(x, strides, pad):
    """Zero-dilate (conv-transpose) and spatially pad an array in (C,B,H,W) layout."""
    # TODO(synk): replace with the stride-2 phase decomposition so the inserted
    #             zeros are never streamed (review item #2).
    c, b, h, w = x.shape
    sh, sw = strides
    hd = (h - 1) * sh + 1
    wd = (w - 1) * sw + 1
    xd = jnp.zeros((c, b, hd, wd), x.dtype).at[:, :, ::sh, ::sw].set(x)
    return jnp.pad(xd, ((0, 0), (0, 0), (pad, pad), (pad, pad)))


def decoder_block_forward(input_nchw, concat_nchw, params, strides, deep=False,
                          compute_dtype=jnp.bfloat16):
    """Pallas implementation of DecoderBlock.forward (training-mode BN, no bias)."""
    w_t = params["w_deconv"]                       # torch ConvTranspose2d: (Cin,Cout,3,3)

    # ---- stage 1: ConvTranspose2d == conv over the dilated input, flipped kernel
    x = jnp.transpose(input_nchw, (1, 0, 2, 3))    # NCHW -> (Cin, B, T, F)
    xdp = _dilate_and_pad_cbhw(x, strides, pad=2)
    w_eq = jnp.transpose(w_t[:, :, ::-1, ::-1], (1, 0, 2, 3))     # (Cout, Cin, 3, 3)
    y = conv3x3_bn_relu(xdp, w_eq, params["bn1_gamma"], params["bn1_beta"],
                        compute_dtype=compute_dtype, out_dtype=compute_dtype)

    # ---- prune (matches torch: BN/ReLU happen before pruning) ------------------
    if strides[-2] != 1:
        y = y[:, :, :-1, :-1]
    else:
        y = y[:, :, 1:-1, :-1]

    # ---- ConvBlock(s): channel-concat with the skip folded into the input slab --
    skip = jnp.transpose(concat_nchw, (1, 0, 2, 3)).astype(compute_dtype)

    def conv_block(parts, w_conv, gamma, beta, out_dtype):
        z = jnp.concatenate(parts, axis=0) if len(parts) > 1 else parts[0]
        z = jnp.pad(z, ((0, 0), (0, 0), (1, 1), (1, 1)))
        return conv3x3_bn_relu(z, w_conv, gamma, beta,
                               compute_dtype=compute_dtype, out_dtype=out_dtype)

    if deep:   # DeepConvBlock: two ConvBlocks
        z = conv_block([y, skip], params["w_conv1"], params["bn2_gamma"],
                       params["bn2_beta"], compute_dtype)
        z = conv_block([z], params["w_conv2"], params["bn3_gamma"],
                       params["bn3_beta"], jnp.float32)
    else:
        z = conv_block([y, skip], params["w_conv1"], params["bn2_gamma"],
                       params["bn2_beta"], jnp.float32)

    return jnp.transpose(z, (1, 0, 2, 3))          # (C,B,H,W) -> NCHW


# --------------------------- deterministic init -------------------------------
def _xavier_uniform(key, shape):
    rf = shape[2] * shape[3]
    fan_in = shape[1] * rf
    fan_out = shape[0] * rf
    a = math.sqrt(6.0 / (fan_in + fan_out))
    return jax.random.uniform(key, shape, jnp.float32, -a, a)


# ------------------------------ pure-JAX reference ----------------------------
def _bn_relu_ref(y_nchw):
    mean = y_nchw.mean(axis=(0, 2, 3), keepdims=True)
    var = ((y_nchw - mean) ** 2).mean(axis=(0, 2, 3), keepdims=True)
    return jnp.maximum((y_nchw - mean) * lax.rsqrt(var + _BN_EPS), 0.0)


def ref_forward(input_nchw, concat_nchw, params, strides):
    w_t = params["w_deconv"]
    w_eq = jnp.transpose(w_t[:, :, ::-1, ::-1], (1, 0, 2, 3))     # (Cout, Cin, 3, 3)
    y = lax.conv_general_dilated(
        input_nchw, w_eq, (1, 1), ((2, 2), (2, 2)), lhs_dilation=strides,
        dimension_numbers=("NCHW", "OIHW", "NCHW"),
        precision=lax.Precision.HIGHEST)
    y = _bn_relu_ref(y)
    if strides[-2] != 1:
        y = y[:, :, :-1, :-1]
    else:
        y = y[:, :, 1:-1, :-1]
    y = jnp.concatenate([y, concat_nchw], axis=1)
    z = lax.conv_general_dilated(
        y, params["w_conv1"], (1, 1), ((1, 1), (1, 1)),
        dimension_numbers=("NCHW", "OIHW", "NCHW"),
        precision=lax.Precision.HIGHEST)
    return _bn_relu_ref(z)


# ----------------------------------- main --------------------------------------
if __name__ == "__main__":
    key = jax.random.PRNGKey(0)
    B, Cin, T, F = 2, 4, 8, 8
    Cout = 4
    strides = (2, 2)

    k1, k2, k3, k4 = jax.random.split(key, 4)
    input_tensor = jax.random.normal(k1, (B, Cin, T, F), jnp.float32)
    concat_tensor = jax.random.normal(
        k2, (B, Cout, T * strides[0], F * strides[1]), jnp.float32)

    params = {
        # torch ConvTranspose2d weight layout: (in_channels, out_channels, 3, 3)
        "w_deconv": _xavier_uniform(k3, (Cin, Cout, 3, 3)),
        "bn1_gamma": jnp.ones((Cout,), jnp.float32),
        "bn1_beta": jnp.zeros((Cout,), jnp.float32),
        # ConvBlock conv: (out_channels, 2*out_channels, 3, 3), bias=False
        "w_conv1": _xavier_uniform(k4, (Cout, 2 * Cout, 3, 3)),
        "bn2_gamma": jnp.ones((Cout,), jnp.float32),
        "bn2_beta": jnp.zeros((Cout,), jnp.float32),
    }

    expected_shape = (B, Cout, T * strides[0], F * strides[1])
    ref = jax.block_until_ready(ref_forward(input_tensor, concat_tensor, params, strides))

    # f32 streams: same kernels, tight algorithmic check.
    fwd_f32 = jax.jit(functools.partial(
        decoder_block_forward, strides=strides, deep=False, compute_dtype=jnp.float32))
    out_f32 = jax.block_until_ready(fwd_f32(input_tensor, concat_tensor, params))
    assert out_f32.shape == expected_shape, out_f32.shape
    err_f32 = float(jnp.abs(out_f32 - ref).max())
    assert jnp.allclose(out_f32, ref, atol=2e-4, rtol=2e-4), err_f32

    # bf16 streams (production config): halves HBM traffic; deliberately looser check.
    fwd_bf16 = jax.jit(functools.partial(
        decoder_block_forward, strides=strides, deep=False, compute_dtype=jnp.bfloat16))
    out_bf16 = jax.block_until_ready(fwd_bf16(input_tensor, concat_tensor, params))
    assert out_bf16.shape == expected_shape, out_bf16.shape
    out_bf16 = out_bf16.astype(jnp.float32)
    err_bf16 = float(jnp.abs(out_bf16 - ref).max())
    assert jnp.allclose(out_bf16, ref, atol=7e-2, rtol=7e-2), err_bf16

    print("KERNEL_OK")
</pallas_src>

<mosaic_0001>
module attributes {stable_mosaic.version = 11 : i64} {
  func.func @_conv_stats_kernel(%arg0: i32, %arg1: memref<9x8x8xf32, #tpu.memory_space<vmem>>, %arg2: memref<8x896xf32, #tpu.memory_space<vmem>>, %arg3: memref<1x768xf32, #tpu.memory_space<vmem>>, %arg4: memref<8x768xf32, #tpu.memory_space<vmem>>, %arg5: memref<8x1xf32, #tpu.memory_space<vmem>>, %arg6: memref<8x1xf32, #tpu.memory_space<vmem>>) attributes {dimension_semantics = [#tpu.dimension_semantics<parallel>], iteration_bounds = array<i64: 1>, scalar_prefetch = 0 : i64, scratch_operands = 0 : i64, tpu.core_type = #tpu.core_type<tc>, window_params = [{pipeline_mode = #tpu.pipeline_mode<synchronous>, transform_indices = @transform_0, window_bounds = array<i64: 9, 8, 8>}, {transform_indices = @transform_1, window_bounds = array<i64: 8, 896>}, {transform_indices = @transform_2, window_bounds = array<i64: 1, 768>}, {transform_indices = @transform_3, window_bounds = array<i64: 8, 768>}, {transform_indices = @transform_4, window_bounds = array<i64: 8, 1>}, {transform_indices = @transform_5, window_bounds = array<i64: 8, 1>}]} {
    %c0 = arith.constant 0 : index
    %c0_0 = arith.constant 0 : index
    %0 = vector.load %arg2[%c0, %c0_0] : memref<8x896xf32, #tpu.memory_space<vmem>>, vector<8x896xf32>
    %c0_1 = arith.constant 0 : index
    %c0_2 = arith.constant 0 : index
    %1 = vector.load %arg3[%c0_1, %c0_2] : memref<1x768xf32, #tpu.memory_space<vmem>>, vector<1x768xf32>
    %cst = arith.constant 0.000000e+00 : f32
    %2 = vector.broadcast %cst : f32 to vector<8x768xf32>
    %3 = vector.extract_strided_slice %0 {offsets = [0, 0], sizes = [8, 768], strides = [1, 1]} : vector<8x896xf32> to vector<8x768xf32>
    %c0_3 = arith.constant 0 : index
    %c0_4 = arith.constant 0 : index
    %c0_5 = arith.constant 0 : index
    %4 = vector.load %arg1[%c0_3, %c0_4, %c0_5] : memref<9x8x8xf32, #tpu.memory_space<vmem>>, vector<1x8x8xf32>
    %5 = vector.shape_cast %4 : vector<1x8x8xf32> to vector<8x8xf32>
    %cst_6 = arith.constant dense<0.000000e+00> : vector<8x768xf32>
    %6 = tpu.matmul %5, %3, %cst_6 {dimension_numbers = #tpu.dot_dimension_numbers<[1], [0], [0], [1], [0, 0, 1, 1], [], []>} : vector<8x8xf32>, vector<8x768xf32>, vector<8x768xf32> -> vector<8x768xf32>
    %7 = arith.addf %2, %6 : vector<8x768xf32>
    %8 = vector.extract_strided_slice %0 {offsets = [0, 1], sizes = [8, 768], strides = [1, 1]} : vector<8x896xf32> to vector<8x768xf32>
    %c1 = arith.constant 1 : index
    %c0_7 = arith.constant 0 : index
    %c0_8 = arith.constant 0 : index
    %9 = vector.load %arg1[%c1, %c0_7, %c0_8] : memref<9x8x8xf32, #tpu.memory_space<vmem>>, vector<1x8x8xf32>
    %10 = vector.shape_cast %9 : vector<1x8x8xf32> to vector<8x8xf32>
    %cst_9 = arith.constant dense<0.000000e+00> : vector<8x768xf32>
    %11 = tpu.matmul %10, %8, %cst_9 {dimension_numbers = #tpu.dot_dimension_numbers<[1], [0], [0], [1], [0, 0, 1, 1], [], []>} : vector<8x8xf32>, vector<8x768xf32>, vector<8x768xf32> -> vector<8x768xf32>
    %12 = arith.addf %7, %11 : vector<8x768xf32>
    %13 = vector.extract_strided_slice %0 {offsets = [0, 2], sizes = [8, 768], strides = [1, 1]} : vector<8x896xf32> to vector<8x768xf32>
    %c2 = arith.constant 2 : index
    %c0_10 = arith.constant 0 : index
    %c0_11 = arith.constant 0 : index
    %14 = vector.load %arg1[%c2, %c0_10, %c0_11] : memref<9x8x8xf32, #tpu.memory_space<vmem>>, vector<1x8x8xf32>
    %15 = vector.shape_cast %14 : vector<1x8x8xf32> to vector<8x8xf32>
    %cst_12 = arith.constant dense<0.000000e+00> : vector<8x768xf32>
    %16 = tpu.matmul %15, %13, %cst_12 {dimension_numbers = #tpu.dot_dimension_numbers<[1], [0], [0], [1], [0, 0, 1, 1], [], []>} : vector<8x8xf32>, vector<8x768xf32>, vector<8x768xf32> -> vector<8x768xf32>
    %17 = arith.addf %12, %16 : vector<8x768xf32>
    %18 = vector.extract_strided_slice %0 {offsets = [0, 19], sizes = [8, 768], strides = [1, 1]} : vector<8x896xf32> to vector<8x768xf32>
    %c3 = arith.constant 3 : index
    %c0_13 = arith.constant 0 : index
    %c0_14 = arith.constant 0 : index
    %19 = vector.load %arg1[%c3, %c0_13, %c0_14] : memref<9x8x8xf32, #tpu.memory_space<vmem>>, vector<1x8x8xf32>
    %20 = vector.shape_cast %19 : vector<1x8x8xf32> to vector<8x8xf32>
    %cst_15 = arith.constant dense<0.000000e+00> : vector<8x768xf32>
    %21 = tpu.matmul %20, %18, %cst_15 {dimension_numbers = #tpu.dot_dimension_numbers<[1], [0], [0], [1], [0, 0, 1, 1], [], []>} : vector<8x8xf32>, vector<8x768xf32>, vector<8x768xf32> -> vector<8x768xf32>
    %22 = arith.addf %17, %21 : vector<8x768xf32>
    %23 = vector.extract_strided_slice %0 {offsets = [0, 20], sizes = [8, 768], strides = [1, 1]} : vector<8x896xf32> to vector<8x768xf32>
    %c4 = arith.constant 4 : index
    %c0_16 = arith.constant 0 : index
    %c0_17 = arith.constant 0 : index
    %24 = vector.load %arg1[%c4, %c0_16, %c0_17] : memref<9x8x8xf32, #tpu.memory_space<vmem>>, vector<1x8x8xf32>
    %25 = vector.shape_cast %24 : vector<1x8x8xf32> to vector<8x8xf32>
    %cst_18 = arith.constant dense<0.000000e+00> : vector<8x768xf32>
    %26 = tpu.matmul %25, %23, %cst_18 {dimension_numbers = #tpu.dot_dimension_numbers<[1], [0], [0], [1], [0, 0, 1, 1], [], []>} : vector<8x8xf32>, vector<8x768xf32>, vector<8x768xf32> -> vector<8x768xf32>
    %27 = arith.addf %22, %26 : vector<8x768xf32>
    %28 = vector.extract_strided_slice %0 {offsets = [0, 21], sizes = [8, 768], strides = [1, 1]} : vector<8x896xf32> to vector<8x768xf32>
    %c5 = arith.constant 5 : index
    %c0_19 = arith.constant 0 : index
    %c0_20 = arith.constant 0 : index
    %29 = vector.load %arg1[%c5, %c0_19, %c0_20] : memref<9x8x8xf32, #tpu.memory_space<vmem>>, vector<1x8x8xf32>
    %30 = vector.shape_cast %29 : vector<1x8x8xf32> to vector<8x8xf32>
    %cst_21 = arith.constant dense<0.000000e+00> : vector<8x768xf32>
    %31 = tpu.matmul %30, %28, %cst_21 {dimension_numbers = #tpu.dot_dimension_numbers<[1], [0], [0], [1], [0, 0, 1, 1], [], []>} : vector<8x8xf32>, vector<8x768xf32>, vector<8x768xf32> -> vector<8x768xf32>
    %32 = arith.addf %27, %31 : vector<8x768xf32>
    %33 = vector.extract_strided_slice %0 {offsets = [0, 38], sizes = [8, 768], strides = [1, 1]} : vector<8x896xf32> to vector<8x768xf32>
    %c6 = arith.constant 6 : index
    %c0_22 = arith.constant 0 : index
    %c0_23 = arith.constant 0 : index
    %34 = vector.load %arg1[%c6, %c0_22, %c0_23] : memref<9x8x8xf32, #tpu.memory_space<vmem>>, vector<1x8x8xf32>
    %35 = vector.shape_cast %34 : vector<1x8x8xf32> to vector<8x8xf32>
    %cst_24 = arith.constant dense<0.000000e+00> : vector<8x768xf32>
    %36 = tpu.matmul %35, %33, %cst_24 {dimension_numbers = #tpu.dot_dimension_numbers<[1], [0], [0], [1], [0, 0, 1, 1], [], []>} : vector<8x8xf32>, vector<8x768xf32>, vector<8x768xf32> -> vector<8x768xf32>
    %37 = arith.addf %32, %36 : vector<8x768xf32>
    %38 = vector.extract_strided_slice %0 {offsets = [0, 39], sizes = [8, 768], strides = [1, 1]} : vector<8x896xf32> to vector<8x768xf32>
    %c7 = arith.constant 7 : index
    %c0_25 = arith.constant 0 : index
    %c0_26 = arith.constant 0 : index
    %39 = vector.load %arg1[%c7, %c0_25, %c0_26] : memref<9x8x8xf32, #tpu.memory_space<vmem>>, vector<1x8x8xf32>
    %40 = vector.shape_cast %39 : vector<1x8x8xf32> to vector<8x8xf32>
    %cst_27 = arith.constant dense<0.000000e+00> : vector<8x768xf32>
    %41 = tpu.matmul %40, %38, %cst_27 {dimension_numbers = #tpu.dot_dimension_numbers<[1], [0], [0], [1], [0, 0, 1, 1], [], []>} : vector<8x8xf32>, vector<8x768xf32>, vector<8x768xf32> -> vector<8x768xf32>
    %42 = arith.addf %37, %41 : vector<8x768xf32>
    %43 = vector.extract_strided_slice %0 {offsets = [0, 40], sizes = [8, 768], strides = [1, 1]} : vector<8x896xf32> to vector<8x768xf32>
    %c8 = arith.constant 8 : index
    %c0_28 = arith.constant 0 : index
    %c0_29 = arith.constant 0 : index
    %44 = vector.load %arg1[%c8, %c0_28, %c0_29] : memref<9x8x8xf32, #tpu.memory_space<vmem>>, vector<1x8x8xf32>
    %45 = vector.shape_cast %44 : vector<1x8x8xf32> to vector<8x8xf32>
    %cst_30 = arith.constant dense<0.000000e+00> : vector<8x768xf32>
    %46 = tpu.matmul %45, %43, %cst_30 {dimension_numbers = #tpu.dot_dimension_numbers<[1], [0], [0], [1], [0, 0, 1, 1], [], []>} : vector<8x8xf32>, vector<8x768xf32>, vector<8x768xf32> -> vector<8x768xf32>
    %47 = arith.addf %42, %46 : vector<8x768xf32>
    %48 = vector.broadcast %1 : vector<1x768xf32> to vector<8x768xf32>
    %49 = arith.mulf %47, %48 : vector<8x768xf32>
    %c0_31 = arith.constant 0 : index
    %c0_32 = arith.constant 0 : index
    %50 = vector.load %arg4[%c0_31, %c0_32] : memref<8x768xf32, #tpu.memory_space<vmem>>, vector<8x768xf32>
    tpu.vector_store %arg4[%c0_31, %c0_32], %49 {strides = array<i32>} : memref<8x768xf32, #tpu.memory_space<vmem>>, vector<8x768xf32>,
    %cst_33 = arith.constant dense<0.000000e+00> : vector<8xf32>
    %51 = vector.multi_reduction <add>, %49, %cst_33 [1] : vector<8x768xf32> to vector<8xf32>
    %52 = vector.shape_cast %51 : vector<8xf32> to vector<8x1xf32>
    %c0_34 = arith.constant 0 : index
    %c0_35 = arith.constant 0 : index
    %53 = vector.load %arg5[%c0_34, %c0_35] : memref<8x1xf32, #tpu.memory_space<vmem>>, vector<8x1xf32>
    tpu.vector_store %arg5[%c0_34, %c0_35], %52 {strides = array<i32>} : memref<8x1xf32, #tpu.memory_space<vmem>>, vector<8x1xf32>,
    %54 = arith.mulf %49, %49 : vector<8x768xf32>
    %cst_36 = arith.constant dense<0.000000e+00> : vector<8xf32>
    %55 = vector.multi_reduction <add>, %54, %cst_36 [1] : vector<8x768xf32> to vector<8xf32>
    %56 = vector.shape_cast %55 : vector<8xf32> to vector<8x1xf32>
    %c0_37 = arith.constant 0 : index
    %c0_38 = arith.constant 0 : index
    %57 = vector.load %arg6[%c0_37, %c0_38] : memref<8x1xf32, #tpu.memory_space<vmem>>, vector<8x1xf32>
    tpu.vector_store %arg6[%c0_37, %c0_38], %56 {strides = array<i32>} : memref<8x1xf32, #tpu.memory_space<vmem>>, vector<8x1xf32>,
    return
  }
  func.func @transform_0(%arg0: i32) -> (i32, i32, i32) {
    %c0_i32 = arith.constant 0 : i32
    %c0_i32_0 = arith.constant 0 : i32
    %c0_i32_1 = arith.constant 0 : i32
    %c0_i32_2 = arith.constant 0 : i32
    return %c0_i32, %c0_i32_0, %c0_i32_1 : i32, i32, i32
  }
  func.func @transform_1(%arg0: i32) -> (i32, i32) {
    %c0_i32 = arith.constant 0 : i32
    %c0_i32_0 = arith.constant 0 : i32
    return %arg0, %c0_i32 : i32, i32
  }
  func.func @transform_2(%arg0: i32) -> (i32, i32) {
    %c0_i32 = arith.constant 0 : i32
    %c0_i32_0 = arith.constant 0 : i32
    return %c0_i32, %arg0 : i32, i32
  }
  func.func @transform_3(%arg0: i32) -> (i32, i32) {
    %c0_i32 = arith.constant 0 : i32
    %c0_i32_0 = arith.constant 0 : i32
    return %c0_i32, %arg0 : i32, i32
  }
  func.func @transform_4(%arg0: i32) -> (i32, i32) {
    %c0_i32 = arith.constant 0 : i32
    %c0_i32_0 = arith.constant 0 : i32
    return %arg0, %c0_i32 : i32, i32
  }
  func.func @transform_5(%arg0: i32) -> (i32, i32) {
    %c0_i32 = arith.constant 0 : i32
    %c0_i32_0 = arith.constant 0 : i32
    return %arg0, %c0_i32 : i32, i32
  }
}

module attributes {stable_mosaic.version = 11 : i64} {
  func.func @_bn_relu_kernel(%arg0: i32, %arg1: memref<8x1xf32, #tpu.memory_space<vmem>>, %arg2: memref<8x1xf32, #tpu.memory_space<vmem>>, %arg3: memref<8x768xf32, #tpu.memory_space<vmem>>, %arg4: memref<8x768xf32, #tpu.memory_space<vmem>>) attributes {dimension_semantics = [#tpu.dimension_semantics<parallel>], iteration_bounds = array<i64: 1>, scalar_prefetch = 0 : i64, scratch_operands = 0 : i64, tpu.core_type = #tpu.core_type<tc>, window_params = [{pipeline_mode = #tpu.pipeline_mode<synchronous>, transform_indices = @transform_0, window_bounds = array<i64: 8, 1>}, {pipeline_mode = #tpu.pipeline_mode<synchronous>, transform_indices = @transform_1, window_bounds = array<i64: 8, 1>}, {transform_indices = @transform_2, window_bounds = array<i64: 8, 768>}, {transform_indices = @transform_3, window_bounds = array<i64: 8, 768>}]} {
    %c0 = arith.constant 0 : index
    %c0_0 = arith.constant 0 : index
    %0 = vector.load %arg3[%c0, %c0_0] : memref<8x768xf32, #tpu.memory_space<vmem>>, vector<8x768xf32>
    %c0_1 = arith.constant 0 : index
    %c0_2 = arith.constant 0 : index
    %1 = vector.load %arg1[%c0_1, %c0_2] : memref<8x1xf32, #tpu.memory_space<vmem>>, vector<8x1xf32>
    %2 = vector.broadcast %1 : vector<8x1xf32> to vector<8x768xf32>
    %3 = arith.mulf %0, %2 : vector<8x768xf32>
    %c0_3 = arith.constant 0 : index
    %c0_4 = arith.constant 0 : index
    %4 = vector.load %arg2[%c0_3, %c0_4] : memref<8x1xf32, #tpu.memory_space<vmem>>, vector<8x1xf32>
    %5 = vector.broadcast %4 : vector<8x1xf32> to vector<8x768xf32>
    %6 = arith.addf %3, %5 : vector<8x768xf32>
    %cst = arith.constant 0.000000e+00 : f32
    %7 = vector.broadcast %cst : f32 to vector<8x768xf32>
    %8 = arith.maximumf %6, %7 : vector<8x768xf32>
    %c0_5 = arith.constant 0 : index
    %c0_6 = arith.constant 0 : index
    %9 = vector.load %arg4[%c0_5, %c0_6] : memref<8x768xf32, #tpu.memory_space<vmem>>, vector<8x768xf32>
    tpu.vector_store %arg4[%c0_5, %c0_6], %8 {strides = array<i32>} : memref<8x768xf32, #tpu.memory_space<vmem>>, vector<8x768xf32>,
    return
  }
  func.func @transform_0(%arg0: i32) -> (i32, i32) {
    %c0_i32 = arith.constant 0 : i32
    %c0_i32_0 = arith.constant 0 : i32
    %c0_i32_1 = arith.constant 0 : i32
    return %c0_i32, %c0_i32_0 : i32, i32
  }
  func.func @transform_1(%arg0: i32) -> (i32, i32) {
    %c0_i32 = arith.constant 0 : i32
    %c0_i32_0 = arith.constant 0 : i32
    %c0_i32_1 = arith.constant 0 : i32
    return %c0_i32, %c0_i32_0 : i32, i32
  }
  func.func @transform_2(%arg0: i32) -> (i32, i32) {
    %c0_i32 = arith.constant 0 : i32
    %c0_i32_0 = arith.constant 0 : i32
    return %c0_i32, %arg0 : i32, i32
  }
  func.func @transform_3(%arg0: i32) -> (i32, i32) {
    %c0_i32 = arith.constant 0 : i32
    %c0_i32_0 = arith.constant 0 : i32
    return %c0_i32, %arg0 : i32, i32
  }
}

module attributes {stable_mosaic.version = 11 : i64} {
  func.func @_conv_stats_kernel(%arg0: i32, %arg1: memref<9x8x8xf32, #tpu.memory_space<vmem>>, %arg2: memref<8x896xf32, #tpu.memory_space<vmem>>, %arg3: memref<1x768xf32, #tpu.memory_space<vmem>>, %arg4: memref<8x768xf32, #tpu.memory_space<vmem>>, %arg5: memref<8x1xf32, #tpu.memory_space<vmem>>, %arg6: memref<8x1xf32, #tpu.memory_space<vmem>>) attributes {dimension_semantics = [#tpu.dimension_semantics<parallel>], iteration_bounds = array<i64: 1>, scalar_prefetch = 0 : i64, scratch_operands = 0 : i64, tpu.core_type = #tpu.core_type<tc>, window_params = [{pipeline_mode = #tpu.pipeline_mode<synchronous>, transform_indices = @transform_0, window_bounds = array<i64: 9, 8, 8>}, {transform_indices = @transform_1, window_bounds = array<i64: 8, 896>}, {transform_indices = @transform_2, window_bounds = array<i64: 1, 768>}, {transform_indices = @transform_3, window_bounds = array<i64: 8, 768>}, {transform_indices = @transform_4, window_bounds = array<i64: 8, 1>}, {transform_indices = @transform_5, window_bounds = array<i64: 8, 1>}]} {
    %c0 = arith.constant 0 : index
    %c0_0 = arith.constant 0 : index
    %0 = vector.load %arg2[%c0, %c0_0] : memref<8x896xf32, #tpu.memory_space<vmem>>, vector<8x896xf32>
    %c0_1 = arith.constant 0 : index
    %c0_2 = arith.constant 0 : index
    %1 = vector.load %arg3[%c0_1, %c0_2] : memref<1x768xf32, #tpu.memory_space<vmem>>, vector<1x768xf32>
    %cst = arith.constant 0.000000e+00 : f32
    %2 = vector.broadcast %cst : f32 to vector<8x768xf32>
    %3 = vector.extract_strided_slice %0 {offsets = [0, 0], sizes = [8, 768], strides = [1, 1]} : vector<8x896xf32> to vector<8x768xf32>
    %c0_3 = arith.constant 0 : index
    %c0_4 = arith.constant 0 : index
    %c0_5 = arith.constant 0 : index
    %4 = vector.load %arg1[%c0_3, %c0_4, %c0_5] : memref<9x8x8xf32, #tpu.memory_space<vmem>>, vector<1x8x8xf32>
    %5 = vector.shape_cast %4 : vector<1x8x8xf32> to vector<8x8xf32>
    %cst_6 = arith.constant dense<0.000000e+00> : vector<8x768xf32>
    %6 = tpu.matmul %5, %3, %cst_6 {dimension_numbers = #tpu.dot_dimension_numbers<[1], [0], [0], [1], [0, 0, 1, 1], [], []>} : vector<8x8xf32>, vector<8x768xf32>, vector<8x768xf32> -> vector<8x768xf32>
    %7 = arith.addf %2, %6 : vector<8x768xf32>
    %8 = vector.extract_strided_slice %0 {offsets = [0, 1], sizes = [8, 768], strides = [1, 1]} : vector<8x896xf32> to vector<8x768xf32>
    %c1 = arith.constant 1 : index
    %c0_7 = arith.constant 0 : index
    %c0_8 = arith.constant 0 : index
    %9 = vector.load %arg1[%c1, %c0_7, %c0_8] : memref<9x8x8xf32, #tpu.memory_space<vmem>>, vector<1x8x8xf32>
    %10 = vector.shape_cast %9 : vector<1x8x8xf32> to vector<8x8xf32>
    %cst_9 = arith.constant dense<0.000000e+00> : vector<8x768xf32>
    %11 = tpu.matmul %10, %8, %cst_9 {dimension_numbers = #tpu.dot_dimension_numbers<[1], [0], [0], [1], [0, 0, 1, 1], [], []>} : vector<8x8xf32>, vector<8x768xf32>, vector<8x768xf32> -> vector<8x768xf32>
    %12 = arith.addf %7, %11 : vector<8x768xf32>
    %13 = vector.extract_strided_slice %0 {offsets = [0, 2], sizes = [8, 768], strides = [1, 1]} : vector<8x896xf32> to vector<8x768xf32>
    %c2 = arith.constant 2 : index
    %c0_10 = arith.constant 0 : index
    %c0_11 = arith.constant 0 : index
    %14 = vector.load %arg1[%c2, %c0_10, %c0_11] : memref<9x8x8xf32, #tpu.memory_space<vmem>>, vector<1x8x8xf32>
    %15 = vector.shape_cast %14 : vector<1x8x8xf32> to vector<8x8xf32>
    %cst_12 = arith.constant dense<0.000000e+00> : vector<8x768xf32>
    %16 = tpu.matmul %15, %13, %cst_12 {dimension_numbers = #tpu.dot_dimension_numbers<[1], [0], [0], [1], [0, 0, 1, 1], [], []>} : vector<8x8xf32>, vector<8x768xf32>, vector<8x768xf32> -> vector<8x768xf32>
    %17 = arith.addf %12, %16 : vector<8x768xf32>
    %18 = vector.extract_strided_slice %0 {offsets = [0, 18], sizes = [8, 768], strides = [1, 1]} : vector<8x896xf32> to vector<8x768xf32>
    %c3 = arith.constant 3 : index
    %c0_13 = arith.constant 0 : index
    %c0_14 = arith.constant 0 : index
    %19 = vector.load %arg1[%c3, %c0_13, %c0_14] : memref<9x8x8xf32, #tpu.memory_space<vmem>>, vector<1x8x8xf32>
    %20 = vector.shape_cast %19 : vector<1x8x8xf32> to vector<8x8xf32>
    %cst_15 = arith.constant dense<0.000000e+00> : vector<8x768xf32>
    %21 = tpu.matmul %20, %18, %cst_15 {dimension_numbers = #tpu.dot_dimension_numbers<[1], [0], [0], [1], [0, 0, 1, 1], [], []>} : vector<8x8xf32>, vector<8x768xf32>, vector<8x768xf32> -> vector<8x768xf32>
    %22 = arith.addf %17, %21 : vector<8x768xf32>
    %23 = vector.extract_strided_slice %0 {offsets = [0, 19], sizes = [8, 768], strides = [1, 1]} : vector<8x896xf32> to vector<8x768xf32>
    %c4 = arith.constant 4 : index
    %c0_16 = arith.constant 0 : index
    %c0_17 = arith.constant 0 : index
    %24 = vector.load %arg1[%c4, %c0_16, %c0_17] : memref<9x8x8xf32, #tpu.memory_space<vmem>>, vector<1x8x8xf32>
    %25 = vector.shape_cast %24 : vector<1x8x8xf32> to vector<8x8xf32>
    %cst_18 = arith.constant dense<0.000000e+00> : vector<8x768xf32>
    %26 = tpu.matmul %25, %23, %cst_18 {dimension_numbers = #tpu.dot_dimension_numbers<[1], [0], [0], [1], [0, 0, 1, 1], [], []>} : vector<8x8xf32>, vector<8x768xf32>, vector<8x768xf32> -> vector<8x768xf32>
    %27 = arith.addf %22, %26 : vector<8x768xf32>
    %28 = vector.extract_strided_slice %0 {offsets = [0, 20], sizes = [8, 768], strides = [1, 1]} : vector<8x896xf32> to vector<8x768xf32>
    %c5 = arith.constant 5 : index
    %c0_19 = arith.constant 0 : index
    %c0_20 = arith.constant 0 : index
    %29 = vector.load %arg1[%c5, %c0_19, %c0_20] : memref<9x8x8xf32, #tpu.memory_space<vmem>>, vector<1x8x8xf32>
    %30 = vector.shape_cast %29 : vector<1x8x8xf32> to vector<8x8xf32>
    %cst_21 = arith.constant dense<0.000000e+00> : vector<8x768xf32>
    %31 = tpu.matmul %30, %28, %cst_21 {dimension_numbers = #tpu.dot_dimension_numbers<[1], [0], [0], [1], [0, 0, 1, 1], [], []>} : vector<8x8xf32>, vector<8x768xf32>, vector<8x768xf32> -> vector<8x768xf32>
    %32 = arith.addf %27, %31 : vector<8x768xf32>
    %33 = vector.extract_strided_slice %0 {offsets = [0, 36], sizes = [8, 768], strides = [1, 1]} : vector<8x896xf32> to vector<8x768xf32>
    %c6 = arith.constant 6 : index
    %c0_22 = arith.constant 0 : index
    %c0_23 = arith.constant 0 : index
    %34 = vector.load %arg1[%c6, %c0_22, %c0_23] : memref<9x8x8xf32, #tpu.memory_space<vmem>>, vector<1x8x8xf32>
    %35 = vector.shape_cast %34 : vector<1x8x8xf32> to vector<8x8xf32>
    %cst_24 = arith.constant dense<0.000000e+00> : vector<8x768xf32>
    %36 = tpu.matmul %35, %33, %cst_24 {dimension_numbers = #tpu.dot_dimension_numbers<[1], [0], [0], [1], [0, 0, 1, 1], [], []>} : vector<8x8xf32>, vector<8x768xf32>, vector<8x768xf32> -> vector<8x768xf32>
    %37 = arith.addf %32, %36 : vector<8x768xf32>
    %38 = vector.extract_strided_slice %0 {offsets = [0, 37], sizes = [8, 768], strides = [1, 1]} : vector<8x896xf32> to vector<8x768xf32>
    %c7 = arith.constant 7 : index
    %c0_25 = arith.constant 0 : index
    %c0_26 = arith.constant 0 : index
    %39 = vector.load %arg1[%c7, %c0_25, %c0_26] : memref<9x8x8xf32, #tpu.memory_space<vmem>>, vector<1x8x8xf32>
    %40 = vector.shape_cast %39 : vector<1x8x8xf32> to vector<8x8xf32>
    %cst_27 = arith.constant dense<0.000000e+00> : vector<8x768xf32>
    %41 = tpu.matmul %40, %38, %cst_27 {dimension_numbers = #tpu.dot_dimension_numbers<[1], [0], [0], [1], [0, 0, 1, 1], [], []>} : vector<8x8xf32>, vector<8x768xf32>, vector<8x768xf32> -> vector<8x768xf32>
    %42 = arith.addf %37, %41 : vector<8x768xf32>
    %43 = vector.extract_strided_slice %0 {offsets = [0, 38], sizes = [8, 768], strides = [1, 1]} : vector<8x896xf32> to vector<8x768xf32>
    %c8 = arith.constant 8 : index
    %c0_28 = arith.constant 0 : index
    %c0_29 = arith.constant 0 : index
    %44 = vector.load %arg1[%c8, %c0_28, %c0_29] : memref<9x8x8xf32, #tpu.memory_space<vmem>>, vector<1x8x8xf32>
    %45 = vector.shape_cast %44 : vector<1x8x8xf32> to vector<8x8xf32>
    %cst_30 = arith.constant dense<0.000000e+00> : vector<8x768xf32>
    %46 = tpu.matmul %45, %43, %cst_30 {dimension_numbers = #tpu.dot_dimension_numbers<[1], [0], [0], [1], [0, 0, 1, 1], [], []>} : vector<8x8xf32>, vector<8x768xf32>, vector<8x768xf32> -> vector<8x768xf32>
    %47 = arith.addf %42, %46 : vector<8x768xf32>
    %48 = vector.broadcast %1 : vector<1x768xf32> to vector<8x768xf32>
    %49 = arith.mulf %47, %48 : vector<8x768xf32>
    %c0_31 = arith.constant 0 : index
    %c0_32 = arith.constant 0 : index
    %50 = vector.load %arg4[%c0_31, %c0_32] : memref<8x768xf32, #tpu.memory_space<vmem>>, vector<8x768xf32>
    tpu.vector_store %arg4[%c0_31, %c0_32], %49 {strides = array<i32>} : memref<8x768xf32, #tpu.memory_space<vmem>>, vector<8x768xf32>,
    %cst_33 = arith.constant dense<0.000000e+00> : vector<8xf32>
    %51 = vector.multi_reduction <add>, %49, %cst_33 [1] : vector<8x768xf32> to vector<8xf32>
    %52 = vector.shape_cast %51 : vector<8xf32> to vector<8x1xf32>
    %c0_34 = arith.constant 0 : index
    %c0_35 = arith.constant 0 : index
    %53 = vector.load %arg5[%c0_34, %c0_35] : memref<8x1xf32, #tpu.memory_space<vmem>>, vector<8x1xf32>
    tpu.vector_store %arg5[%c0_34, %c0_35], %52 {strides = array<i32>} : memref<8x1xf32, #tpu.memory_space<vmem>>, vector<8x1xf32>,
    %54 = arith.mulf %49, %49 : vector<8x768xf32>
    %cst_36 = arith.constant dense<0.000000e+00> : vector<8xf32>
    %55 = vector.multi_reduction <add>, %54, %cst_36 [1] : vector<8x768xf32> to vector<8xf32>
    %56 = vector.shape_cast %55 : vector<8xf32> to vector<8x1xf32>
    %c0_37 = arith.constant 0 : index
    %c0_38 = arith.constant 0 : index
    %57 = vector.load %arg6[%c0_37, %c0_38] : memref<8x1xf32, #tpu.memory_space<vmem>>, vector<8x1xf32>
    tpu.vector_store %arg6[%c0_37, %c0_38], %56 {strides = array<i32>} : memref<8x1xf32, #tpu.memory_space<vmem>>, vector<8x1xf32>,
    return
  }
  func.func @transform_0(%arg0: i32) -> (i32, i32, i32) {
    %c0_i32 = arith.constant 0 : i32
    %c0_i32_0 = arith.constant 0 : i32
    %c0_i32_1 = arith.constant 0 : i32
    %c0_i32_2 = arith.constant 0 : i32
    return %c0_i32, %c0_i32_0, %c0_i32_1 : i32, i32, i32
  }
  func.func @transform_1(%arg0: i32) -> (i32, i32) {
    %c0_i32 = arith.constant 0 : i32
    %c0_i32_0 = arith.constant 0 : i32
    return %arg0, %c0_i32 : i32, i32
  }
  func.func @transform_2(%arg0: i32) -> (i32, i32) {
    %c0_i32 = arith.constant 0 : i32
    %c0_i32_0 = arith.constant 0 : i32
    return %c0_i32, %arg0 : i32, i32
  }
  func.func @transform_3(%arg0: i32) -> (i32, i32) {
    %c0_i32 = arith.constant 0 : i32
    %c0_i32_0 = arith.constant 0 : i32
    return %c0_i32, %arg0 : i32, i32
  }
  func.func @transform_4(%arg0: i32) -> (i32, i32) {
    %c0_i32 = arith.constant 0 : i32
    %c0_i32_0 = arith.constant 0 : i32
    return %arg0, %c0_i32 : i32, i32
  }
  func.func @transform_5(%arg0: i32) -> (i32, i32) {
    %c0_i32 = arith.constant 0 : i32
    %c0_i32_0 = arith.constant 0 : i32
    return %arg0, %c0_i32 : i32, i32
  }
}

</mosaic_0001>

<bundles_post_ra>
// kernel: decoder_block_forward.5
= control target key start
LH: loop header
LB: loop body
LE: loop exit
PB: predicated region body
PF: predicated region fallthrough
CT: control target
= control target key end

     0   :  { %v62_v0 = vmov 0   ;;  %s125_s0 = inlined_call_operand.vmem [shape: f32[8,1], index: 0, kind: input, shape index: {}]   ;;  %s126_s1 = inlined_call_operand.vmem [shape: f32[8,1], index: 1, kind: input, shape index: {}]   ;;  %s127_s2 = inlined_call_operand.vmem [shape: f32[8,768], index: 2, kind: input, shape index: {}]   ;;  %s128_s3 = inlined_call_operand.vmem [shape: f32[8,768], index: 3, kind: output, shape index: {}]  }
   0x1   :  { %61 = vset.pattern.permute.xlu0 %v62_v0  ;;  %v20_v1 = vld [vmem:[%s125_s0] sm:$0xff]  ;;  %v15_v5 = vld [vmem:[%s127_s2 + $0x8] sm:$0xff]  ;;  %v16_v6 = vld [vmem:[%s127_s2 + $0x10] sm:$0xff] }
   0x2   :  { %23 = vperm.xlu0 %61, %v20_v1   ;;  %v32_v2 = vld [vmem:[%s126_s1] sm:$0xff]  ;;  %v17_v7 = vld [vmem:[%s127_s2 + $0x18] sm:$0xff]  ;;  %v19_v9 = vld [vmem:[%s127_s2 + $0x28] sm:$0xff] }
   0x3   :  { %v14_v4 = vld [vmem:[%s127_s2] sm:$0xff] }
   0x4   :  { %v18_v8 = vld [vmem:[%s127_s2 + $0x20] sm:$0xff] }
   0xa   :  { %35 = vperm.xlu0 %61, %v32_v2  }
  0x74   :  { %v24_v3 = vpop.permute.xlu0 %23 }
  0x75   :  { %v26_v10 = vmul.f32 %v24_v3, %v14_v4  ;;  %v27_v11 = vmul.f32 %v24_v3, %v15_v5  ;;  %v28_v12 = vmul.f32 %v24_v3, %v16_v6  ;;  %v29_v13 = vmul.f32 %v24_v3, %v17_v7 }
  0x76   :  { %v30_v14 = vmul.f32 %v24_v3, %v18_v8  ;;  %v31_v15 = vmul.f32 %v24_v3, %v19_v9 }
  0x7c   :  { %v36_v16 = vpop.permute.xlu0 %35 }
  0x7d   :  { %v38_v17 = vadd.f32 %v36_v16, %v26_v10  ;;  %v39_v18 = vadd.f32 %v36_v16, %v27_v11  ;;  %v40_v19 = vadd.f32 %v36_v16, %v28_v12  ;;  %v41_v20 = vadd.f32 %v36_v16, %v29_v13 }
  0x7e   :  { %v42_v21 = vadd.f32 %v36_v16, %v30_v14  ;;  %v43_v22 = vadd.f32 %v36_v16, %v31_v15 }
  0x7f   :  { %v44_v23 = vmax.f32 %v38_v17, 0.0  ;;  %v45_v24 = vmax.f32 %v39_v18, 0.0  ;;  %v46_v25 = vmax.f32 %v40_v19, 0.0  ;;  %v47_v26 = vmax.f32 %v41_v20, 0.0 }
  0x80   :  { %v48_v27 = vmax.f32 %v42_v21, 0.0  ;;  %v49_v28 = vmax.f32 %v43_v22, 0.0 }
  0x81   :  { %50 = vst [vmem:[%s128_s3] sm:$0xff] %v44_v23 }
  0x82   :  { %51 = vst [vmem:[%s128_s3 + $0x8] sm:$0xff] %v45_v24 }
  0x83   :  { %52 = vst [vmem:[%s128_s3 + $0x10] sm:$0xff] %v46_v25 }
  0x84   :  { %53 = vst [vmem:[%s128_s3 + $0x18] sm:$0xff] %v47_v26 }
  0x85   :  { %54 = vst [vmem:[%s128_s3 + $0x20] sm:$0xff] %v48_v27 }
  0x86   :  { %55 = vst [vmem:[%s128_s3 + $0x28] sm:$0xff] %v49_v28 }

// kernel: decoder_block_forward.4
= control target key start
LH: loop header
LB: loop body
LE: loop exit
PB: predicated region body
PF: predicated region fallthrough
CT: control target
= control target key end

     0   :  { %s1665_s26 = smov 127   ;;  %s1666_s27 = smov 126   ;;  %vm49_vm0 = vcmask 1039360   ;;  %vm62_vm1 = vcmask 64512   ;;  %vm325_vm2 = vcmask 1031168   ;;  %vm483_vm3 = vcmask 891904   ;;  %s1909_s1 = inlined_call_operand.vmem [shape: f32[8,896], index: 1, kind: input, shape index: {}]   ;;  %s1910_s0 = inlined_call_operand.vmem [shape: f32[9,8,8], index: 0, kind: input, shape index: {}]   ;;  %s1911_s2 = inlined_call_operand.vmem [shape: f32[1,768], index: 2, kind: input, shape index: {}]   ;;  %s1912_s3 = inlined_call_operand.vmem [shape: f32[8,768], index: 3, kind: output, shape index: {0}]   ;;  %s1913_s4 = inlined_call_operand.vmem [shape: f32[8,1], index: 4, kind: output, shape index: {1}]   ;;  %s1914_s5 = inlined_call_operand.vmem [shape: f32[8,1], index: 5, kind: output, shape index: {2}]  }
   0x1   :  { %v1706_v0 = vld [vmem:[%s1909_s1 + $0x20] sm:$0xff]  ;;  %v1711_v1 = vld [vmem:[%s1909_s1 + $0x28] sm:$0xff]  ;;  %v1716_v2 = vld [vmem:[%s1909_s1 + $0x10] sm:$0xff]  ;;  %s1667_s9 = smov 109   ;;  %s1668_s10 = smov 108   ;;  %vm641_vm4 = vcmask 883712  }
   0x2   :  { %v1555_v3 = vpack.i.bf16 %v1711_v1, %v1706_v0  ;;  %v1723_v4 = vld [vmem:[%s1909_s1 + $0x18] sm:$0xff]  ;;  %v17_v6 = vld [vmem:[%s1909_s1] sm:$0xff]  ;;  %v18_v7 = vld [vmem:[%s1909_s1 + $0x8] sm:$0xff]  ;;  %v1580_v10 = vpack.i.bf16 %v1706_v0, %v1716_v2  ;;  %s1670_s11 = smov 90   ;;  %s1671_s12 = smov 89   ;;  %vm799_vm5 = vcmask 875520  }
   0x3   :  { %v1545_v5 = vpack.i.bf16 %v1723_v4, %v1716_v2  ;;  %v23_v8 = vld [vmem:[%s1909_s1 + $0x30] sm:$0xff]  ;;  %v1550_v9 = vpack.i.bf16 %v18_v7, %v17_v6  ;;  %v1585_v11 = vpack.i.bf16 %v1723_v4, %v1711_v1  ;;  %s1669_s1 = smov 107   ;;  %s1672_s13 = smov 88   ;;  %v1475_v20 = vld [vmem:[%s1910_s0 + $0x8] sm:$0xff]  ;;  %v25_v35 = vld [vmem:[%s1910_s0] sm:$0xff]  ;;  %vm957_vm6 = vcmask 736256  }
   0x4   :  { %1556 = vrot.lane.b32.xlu1 %v1555_v3, %s1665_s26  ;;  %v1660_v12 = vpack.i.bf16 %v23_v8, %v1711_v1  ;;  %v1488_v58 = vld [vmem:[%s1910_s0 + $0x10] sm:$0xff]  ;;  %vm1115_vm7 = vcmask 728064   ;;  %vm1273_vm8 = vcmask 719872   ;;  %vm1447_vm9 = vcmask 7168  }
   0x5   :  { %1546 = vrot.lane.b32.xlu0 %v1545_v5, %s1665_s26  ;;  %1561 = vrot.lane.b32.xlu2 %v1545_v5, %s1666_s27 }
   0xc   :  { %47 = vrot.lane.b32.xlu1 %v23_v8, %s1665_s26 }
   0xd   :  { %1551 = vrot.lane.b32.xlu0 %v1550_v9, %s1665_s26  ;;  %1566 = vrot.lane.b32.xlu2 %v1550_v9, %s1666_s27 }
  0x14   :  { %1576 = vrot.lane.b32.xlu1 %v1550_v9, %s1667_s9 }
  0x15   :  { %1571 = vrot.lane.b32.xlu0 %v1555_v3, %s1666_s27  ;;  %1581 = vrot.lane.b32.xlu2 %v1580_v10, %s1667_s9 }
  0x1c   :  { %1586 = vrot.lane.b32.xlu1 %v1585_v11, %s1667_s9 }
  0x1d   :  { %323 = vrot.lane.b32.xlu0 %v23_v8, %s1666_s27  ;;  %481 = vrot.lane.b32.xlu2 %v23_v8, %s1667_s9 }
  0x24   :  { %1596 = vrot.lane.b32.xlu1 %v1550_v9, %s1668_s10 }
  0x25   :  { %1591 = vrot.lane.b32.xlu0 %v1545_v5, %s1668_s10  ;;  %1601 = vrot.lane.b32.xlu2 %v1555_v3, %s1668_s10 }
  0x2c   :  { %1611 = vrot.lane.b32.xlu1 %v1580_v10, %s1669_s1 }
  0x2d   :  { %1606 = vrot.lane.b32.xlu0 %v1550_v9, %s1669_s1  ;;  %639 = vrot.lane.b32.xlu2 %v23_v8, %s1668_s10 }
  0x34   :  { %797 = vrot.lane.b32.xlu1 %v23_v8, %s1669_s1 }
  0x35   :  { %1616 = vrot.lane.b32.xlu0 %v1585_v11, %s1669_s1  ;;  %1621 = vrot.lane.b32.xlu2 %v1545_v5, %s1670_s11 }
  0x3c   :  { %1631 = vrot.lane.b32.xlu1 %v1555_v3, %s1670_s11 }
  0x3d   :  { %1626 = vrot.lane.b32.xlu0 %v1550_v9, %s1670_s11  ;;  %1636 = vrot.lane.b32.xlu2 %v1550_v9, %s1671_s12 }
  0x44   :  { %955 = vrot.lane.b32.xlu1 %v23_v8, %s1670_s11 }
  0x45   :  { %1641 = vrot.lane.b32.xlu0 %v1580_v10, %s1671_s12  ;;  %1646 = vrot.lane.b32.xlu2 %v1585_v11, %s1671_s12 }
  0x4c   :  { %1651 = vrot.lane.b32.xlu1 %v1545_v5, %s1672_s13 }
  0x4d   :  { %1113 = vrot.lane.b32.xlu0 %v23_v8, %s1671_s12  ;;  %1656 = vrot.lane.b32.xlu2 %v1550_v9, %s1672_s13 }
  0x54   :  { %1661 = vrot.lane.b32.xlu1 %v1660_v12, %s1672_s13 }
  0x55   :  { %1267 = vrot.lane.b32.xlu0 %v1706_v0, %s1672_s13 }
  0x5f   :  { %v1562_v13 = vpop.permute.xlu2 %1561 }
  0x60   :  { %v1564_v28 = vunpack.i.h.bf16 %v1562_v13  ;;  %v1563_v29 = vunpack.i.l.bf16 %v1562_v13 }
  0x62   :  { %v328_v36 = vsel %vm325_vm2, %v1563_v29, %v1564_v28 }
  0x67   :  { %v1567_v17 = vpop.permute.xlu2 %1566 }
  0x68   :  { %v1569_v37 = vunpack.i.h.bf16 %v1567_v17  ;;  %v1568_v38 = vunpack.i.l.bf16 %v1567_v17 }
  0x6a   :  { %v327_v45 = vsel %vm325_vm2, %v1569_v37, %v1563_v29  ;;  %v326_v47 = vsel %vm325_vm2, %v1568_v38, %v1569_v37  ;;  %v1502_v29 = vld [vmem:[%s1910_s0 + $0x20] sm:$0xff] }
  0x6f   :  { %v1751_v30 = vpop.permute.xlu2 %1581 }
  0x70   :  { %v1583_v44 = vunpack.i.l.bf16 %v1751_v30  ;;  %v1584_v54 = vunpack.i.h.bf16 %v1751_v30 }
  0x76   :  { %v1557_v14 = vpop.permute.xlu1 %1556 }
  0x77   :  { %v1558_v15 = vunpack.i.l.bf16 %v1557_v14  ;;  %v1547_v16 = vpop.permute.xlu0 %1546  ;;  %v1559_v23 = vunpack.i.h.bf16 %v1557_v14  ;;  %v482_v48 = vpop.permute.xlu2 %481 }
  0x78   :  { %v1549_v18 = vunpack.i.h.bf16 %v1547_v16  ;;  %v1548_v19 = vunpack.i.l.bf16 %v1547_v16 }
  0x79   :  { %v54_v33 = vsel %vm49_vm0, %v1558_v15, %v1559_v23 }
  0x7a   :  { %v52_v21 = vsel %vm49_vm0, %v1548_v19, %v1549_v18  ;;  %v53_v22 = vsel %vm49_vm0, %v1549_v18, %v1558_v15 }
  0x7b   :  { %121 = vmatpush.msra.mxu2 %v52_v21  ;;  %141 = vmatpush.msra.mxu3 %v53_v22 }
  0x7c   :  { %1478 = vmatmul.msk.f32.vlgmr.msra.gmra.mxu2 %vm62_vm1, %v1475_v20  ;;  %1479 = vmatmul.msk.f32.vlgmr.msra.gmra.mxu3 %vm62_vm1, %v1475_v20 }
  0x7d   :  { %204 = vmatpush.msrb.mxu2 %v17_v6  ;;  %224 = vmatpush.msrb.mxu3 %v18_v7  ;;  %v1495_v6 = vld [vmem:[%s1910_s0 + $0x18] sm:$0xff] }
  0x7e   :  { %v48_v24 = vpop.permute.xlu1 %47 }
  0x7f   :  { %284 = vmatpush.msra.mxu2 %v1706_v0  ;;  %304 = vmatpush.msra.mxu3 %v1711_v1  ;;  %v1552_v25 = vpop.permute.xlu0 %1551  ;;  %v55_v34 = vsel %vm49_vm0, %v1559_v23, %v48_v24  ;;  %v1602_v61 = vpop.permute.xlu2 %1601 }
  0x80   :  { %v1554_v26 = vunpack.i.h.bf16 %v1552_v25  ;;  %v1553_v27 = vunpack.i.l.bf16 %v1552_v25  ;;  %v1603_v3 = vunpack.i.l.bf16 %v1602_v61  ;;  %v1604_v21 = vunpack.i.h.bf16 %v1602_v61 }
  0x82   :  { %v50_v31 = vsel %vm49_vm0, %v1553_v27, %v1554_v26  ;;  %v51_v32 = vsel %vm49_vm0, %v1554_v26, %v1548_v19 }
  0x83   :  { %81 = vmatpush.msra.mxu0 %v50_v31  ;;  %101 = vmatpush.msra.mxu1 %v51_v32 }
  0x84   :  { %1476 = vmatmul.msk.f32.vlgmr.msra.gmra.mxu0 %vm62_vm1, %v1475_v20  ;;  %1477 = vmatmul.msk.f32.vlgmr.msra.gmra.mxu1 %vm62_vm1, %v1475_v20 }
  0x85   :  { %161 = vmatpush.msrb.mxu0 %v54_v33  ;;  %181 = vmatpush.msrb.mxu1 %v55_v34 }
  0x86   :  { %1482 = vmatmul.msk.f32.vlgmr.msrb.gmra.mxu2 %vm62_vm1, %v25_v35  ;;  %1483 = vmatmul.msk.f32.vlgmr.msrb.gmra.mxu3 %vm62_vm1, %v25_v35  ;;  %v1577_v39 = vpop.permute.xlu1 %1576 }
  0x87   :  { %v1572_v40 = vpop.permute.xlu0 %1571  ;;  %264 = vmatpush.msra.mxu1 %v1723_v4  ;;  %244 = vmatpush.msra.mxu0 %v1716_v2  ;;  %v1579_v42 = vunpack.i.h.bf16 %v1577_v39  ;;  %v1578_v43 = vunpack.i.l.bf16 %v1577_v39  ;;  %v640_v16 = vpop.permute.xlu2 %639 }
  0x88   :  { %v1573_v41 = vunpack.i.l.bf16 %v1572_v40  ;;  %396 = vmatpush.msrb.mxu2 %v328_v36  ;;  %v1574_v51 = vunpack.i.h.bf16 %v1572_v40  ;;  %v647_v27 = vsel %vm641_vm4, %v1604_v21, %v640_v16  ;;  %v1509_v40 = vld [vmem:[%s1910_s0 + $0x28] sm:$0xff] }
  0x89   :  { %v484_v49 = vsel %vm483_vm3, %v1578_v43, %v1579_v42  ;;  %v485_v50 = vsel %vm483_vm3, %v1579_v42, %v1583_v44 }
  0x8a   :  { %v329_v46 = vsel %vm325_vm2, %v1564_v28, %v1573_v41  ;;  %v330_v57 = vsel %vm325_vm2, %v1573_v41, %v1574_v51  ;;  %v646_v28 = vsel %vm641_vm4, %v1603_v3, %v1604_v21  ;;  %v1530_v21 = vld [vmem:[%s1910_s0 + $0x40] sm:$0xff] }
  0x8b   :  { %416 = vmatpush.msrb.mxu3 %v329_v46 }
  0x8c   :  { %1480 = vmatmul.msk.f32.vlgmr.msrb.gmra.mxu0 %vm62_vm1, %v1475_v20  ;;  %1481 = vmatmul.msk.f32.vlgmr.msrb.gmra.mxu1 %vm62_vm1, %v1475_v20 }
  0x8d   :  { %376 = vmatpush.msrb.mxu1 %v327_v45  ;;  %356 = vmatpush.msrb.mxu0 %v326_v47 }
  0x8e   :  { %1486 = vmatmul.msk.f32.vlgmr.msra.gmra.mxu2 %vm62_vm1, %v25_v35  ;;  %1487 = vmatmul.msk.f32.vlgmr.msra.gmra.mxu3 %vm62_vm1, %v25_v35  ;;  %v1587_v52 = vpop.permute.xlu1 %1586 }
  0x8f   :  { %v324_v53 = vpop.permute.xlu0 %323  ;;  %514 = vmatpush.msra.mxu2 %v484_v49  ;;  %534 = vmatpush.msra.mxu3 %v485_v50  ;;  %v1588_v55 = vunpack.i.l.bf16 %v1587_v52  ;;  %v1589_v62 = vunpack.i.h.bf16 %v1587_v52  ;;  %v1622_v26 = vpop.permute.xlu2 %1621 }
  0x90   :  { %v331_v56 = vsel %vm325_vm2, %v1574_v51, %v324_v53  ;;  %v1623_v36 = vunpack.i.l.bf16 %v1622_v26 }
  0x91   :  { %v489_v59 = vsel %vm483_vm3, %v1588_v55, %v482_v48  ;;  %v488_v60 = vsel %vm483_vm3, %v1584_v54, %v1588_v55  ;;  %v486_v4 = vsel %vm483_vm3, %v1583_v44, %v1589_v62  ;;  %v487_v5 = vsel %vm483_vm3, %v1589_v62, %v1584_v54  ;;  %v1516_v62 = vld [vmem:[%s1910_s0 + $0x30] sm:$0xff] }
  0x94   :  { %1484 = vmatmul.msk.f32.vlgmr.msra.gmra.mxu0 %vm62_vm1, %v25_v35  ;;  %1485 = vmatmul.msk.f32.vlgmr.msra.gmra.mxu1 %vm62_vm1, %v25_v35  ;;  %v1624_v35 = vunpack.i.h.bf16 %v1622_v26 }
  0x95   :  { %436 = vmatpush.msra.mxu0 %v330_v57  ;;  %456 = vmatpush.msra.mxu1 %v331_v56 }
  0x96   :  { %1491 = vmatmul.msk.f32.vlgmr.msrb.gmra.mxu2 %vm62_vm1, %v1488_v58  ;;  %1492 = vmatmul.msk.f32.vlgmr.msrb.gmra.mxu3 %vm62_vm1, %v1488_v58  ;;  %v1597_v63 = vpop.permute.xlu1 %1596  ;;  %v960_v42 = vsel %vm957_vm6, %v1623_v36, %v1624_v35 }
  0x97   :  { %594 = vmatpush.msrb.mxu2 %v488_v60  ;;  %v1592_v0 = vpop.permute.xlu0 %1591  ;;  %614 = vmatpush.msrb.mxu3 %v489_v59  ;;  %v1599_v9 = vunpack.i.h.bf16 %v1597_v63  ;;  %v1598_v10 = vunpack.i.l.bf16 %v1597_v63  ;;  %v1637_v41 = vpop.permute.xlu2 %1636 }
  0x98   :  { %v1594_v1 = vunpack.i.h.bf16 %v1592_v0  ;;  %v1593_v2 = vunpack.i.l.bf16 %v1592_v0  ;;  %v1639_v47 = vunpack.i.h.bf16 %v1637_v41  ;;  %v1638_v48 = vunpack.i.l.bf16 %v1637_v41 }
  0x99   :  { %v642_v18 = vsel %vm641_vm4, %v1598_v10, %v1599_v9 }
  0x9a   :  { %v644_v7 = vsel %vm641_vm4, %v1593_v2, %v1594_v1  ;;  %v645_v8 = vsel %vm641_vm4, %v1594_v1, %v1603_v3  ;;  %v643_v17 = vsel %vm641_vm4, %v1599_v9, %v1593_v2  ;;  %v1116_v52 = vsel %vm1115_vm7, %v1638_v48, %v1639_v47 }
  0x9c   :  { %1489 = vmatmul.msk.f32.vlgmr.msrb.gmra.mxu0 %vm62_vm1, %v1488_v58  ;;  %1490 = vmatmul.msk.f32.vlgmr.msrb.gmra.mxu1 %vm62_vm1, %v1488_v58 }
  0x9d   :  { %554 = vmatpush.msrb.mxu0 %v486_v4  ;;  %574 = vmatpush.msrb.mxu1 %v487_v5 }
  0x9e   :  { %1496 = vmatmul.msk.f32.vlgmr.msra.gmra.mxu2 %vm62_vm1, %v1495_v6  ;;  %1497 = vmatmul.msk.f32.vlgmr.msra.gmra.mxu3 %vm62_vm1, %v1495_v6  ;;  %v1612_v11 = vpop.permute.xlu1 %1611 }
  0x9f   :  { %v1607_v12 = vpop.permute.xlu0 %1606  ;;  %712 = vmatpush.msra.mxu2 %v644_v7  ;;  %732 = vmatpush.msra.mxu3 %v645_v8  ;;  %v1613_v15 = vunpack.i.l.bf16 %v1612_v11  ;;  %v1614_v24 = vunpack.i.h.bf16 %v1612_v11  ;;  %v1647_v55 = vpop.permute.xlu2 %1646  ;;  %v1523_v8 = vld [vmem:[%s1910_s0 + $0x38] sm:$0xff] }
  0xa0   :  { %v1609_v13 = vunpack.i.h.bf16 %v1607_v12  ;;  %v1608_v14 = vunpack.i.l.bf16 %v1607_v12  ;;  %v1648_v59 = vunpack.i.l.bf16 %v1647_v55  ;;  %v1649_v2 = vunpack.i.h.bf16 %v1647_v55 }
  0xa2   :  { %v800_v19 = vsel %vm799_vm5, %v1608_v14, %v1609_v13  ;;  %v801_v20 = vsel %vm799_vm5, %v1609_v13, %v1613_v15 }
  0xa4   :  { %1493 = vmatmul.msk.f32.vlgmr.msra.gmra.mxu0 %vm62_vm1, %v1488_v58  ;;  %1494 = vmatmul.msk.f32.vlgmr.msra.gmra.mxu1 %vm62_vm1, %v1488_v58 }
  0xa5   :  { %692 = vmatpush.msra.mxu1 %v643_v17  ;;  %672 = vmatpush.msra.mxu0 %v642_v18 }
  0xa6   :  { %1500 = vmatmul.msk.f32.vlgmr.msrb.gmra.mxu2 %vm62_vm1, %v1495_v6  ;;  %1501 = vmatmul.msk.f32.vlgmr.msrb.gmra.mxu3 %vm62_vm1, %v1495_v6  ;;  %v798_v22 = vpop.permute.xlu1 %797 }
  0xa7   :  { %v1617_v23 = vpop.permute.xlu0 %1616  ;;  %830 = vmatpush.msrb.mxu2 %v800_v19  ;;  %850 = vmatpush.msrb.mxu3 %v801_v20  ;;  %v1657_v9 = vpop.permute.xlu2 %1656 }
  0xa8   :  { %v1618_v25 = vunpack.i.l.bf16 %v1617_v23  ;;  %v1619_v32 = vunpack.i.h.bf16 %v1617_v23  ;;  %v1659_v12 = vunpack.i.h.bf16 %v1657_v9  ;;  %v1658_v13 = vunpack.i.l.bf16 %v1657_v9 }
  0xaa   :  { %v805_v30 = vsel %vm799_vm5, %v1618_v25, %v798_v22  ;;  %v804_v31 = vsel %vm799_vm5, %v1614_v24, %v1618_v25  ;;  %v802_v38 = vsel %vm799_vm5, %v1613_v15, %v1619_v32  ;;  %v803_v39 = vsel %vm799_vm5, %v1619_v32, %v1614_v24 }
  0xab   :  { %v1274_v15 = vsel %vm1273_vm8, %v1658_v13, %v1659_v12 }
  0xac   :  { %1498 = vmatmul.msk.f32.vlgmr.msrb.gmra.mxu0 %vm62_vm1, %v1495_v6  ;;  %1499 = vmatmul.msk.f32.vlgmr.msrb.gmra.mxu1 %vm62_vm1, %v1495_v6 }
  0xad   :  { %752 = vmatpush.msrb.mxu0 %v646_v28  ;;  %772 = vmatpush.msrb.mxu1 %v647_v27 }
  0xae   :  { %1505 = vmatmul.msk.f32.vlgmr.msra.gmra.mxu2 %vm62_vm1, %v1502_v29  ;;  %1506 = vmatmul.msk.f32.vlgmr.msra.gmra.mxu3 %vm62_vm1, %v1502_v29  ;;  %v1632_v33 = vpop.permute.xlu1 %1631 }
  0xaf   :  { %910 = vmatpush.msra.mxu2 %v804_v31  ;;  %930 = vmatpush.msra.mxu3 %v805_v30  ;;  %v1627_v34 = vpop.permute.xlu0 %1626  ;;  %v1633_v37 = vunpack.i.l.bf16 %v1632_v33  ;;  %v1634_v56 = vunpack.i.h.bf16 %v1632_v33 }
  0xb0   :  { %v1629_v44 = vunpack.i.h.bf16 %v1627_v34  ;;  %v1628_v45 = vunpack.i.l.bf16 %v1627_v34 }
  0xb1   :  { %v961_v43 = vsel %vm957_vm6, %v1624_v35, %v1633_v37  ;;  %v962_v61 = vsel %vm957_vm6, %v1633_v37, %v1634_v56 }
  0xb2   :  { %v959_v50 = vsel %vm957_vm6, %v1629_v44, %v1623_v36  ;;  %v958_v51 = vsel %vm957_vm6, %v1628_v45, %v1629_v44 }
  0xb4   :  { %1503 = vmatmul.msk.f32.vlgmr.msra.gmra.mxu0 %vm62_vm1, %v1502_v29  ;;  %1504 = vmatmul.msk.f32.vlgmr.msra.gmra.mxu1 %vm62_vm1, %v1502_v29 }
  0xb5   :  { %870 = vmatpush.msra.mxu0 %v802_v38  ;;  %890 = vmatpush.msra.mxu1 %v803_v39 }
  0xb6   :  { %1510 = vmatmul.msk.f32.vlgmr.msrb.gmra.mxu2 %vm62_vm1, %v1509_v40  ;;  %1511 = vmatmul.msk.f32.vlgmr.msrb.gmra.mxu3 %vm62_vm1, %v1509_v40  ;;  %v956_v54 = vpop.permute.xlu1 %955 }
  0xb7   :  { %1028 = vmatpush.msrb.mxu2 %v960_v42  ;;  %1048 = vmatpush.msrb.mxu3 %v961_v43  ;;  %v1642_v46 = vpop.permute.xlu0 %1641  ;;  %v963_v60 = vsel %vm957_vm6, %v1634_v56, %v956_v54 }
  0xb8   :  { %v1643_v49 = vunpack.i.l.bf16 %v1642_v46  ;;  %v1644_v58 = vunpack.i.h.bf16 %v1642_v46 }
  0xba   :  { %v1117_v53 = vsel %vm1115_vm7, %v1639_v47, %v1643_v49  ;;  %v1120_v63 = vsel %vm1115_vm7, %v1644_v58, %v1648_v59  ;;  %v1118_v6 = vsel %vm1115_vm7, %v1643_v49, %v1649_v2  ;;  %v1119_v7 = vsel %vm1115_vm7, %v1649_v2, %v1644_v58 }
  0xbc   :  { %1507 = vmatmul.msk.f32.vlgmr.msrb.gmra.mxu0 %vm62_vm1, %v1502_v29  ;;  %1508 = vmatmul.msk.f32.vlgmr.msrb.gmra.mxu1 %vm62_vm1, %v1502_v29 }
  0xbd   :  { %1008 = vmatpush.msrb.mxu1 %v959_v50  ;;  %988 = vmatpush.msrb.mxu0 %v958_v51 }
  0xbe   :  { %1514 = vmatmul.msk.f32.vlgmr.msra.gmra.mxu2 %vm62_vm1, %v1509_v40  ;;  %1515 = vmatmul.msk.f32.vlgmr.msra.gmra.mxu3 %vm62_vm1, %v1509_v40  ;;  %v1652_v1 = vpop.permute.xlu1 %1651 }
  0xbf   :  { %1146 = vmatpush.msra.mxu2 %v1116_v52  ;;  %1166 = vmatpush.msra.mxu3 %v1117_v53  ;;  %v1114_v57 = vpop.permute.xlu0 %1113  ;;  %v1654_v3 = vunpack.i.h.bf16 %v1652_v1  ;;  %v1653_v4 = vunpack.i.l.bf16 %v1652_v1 }
  0xc0   :  { %v1121_v0 = vsel %vm1115_vm7, %v1648_v59, %v1114_v57 }
  0xc1   :  { %v1276_v11 = vsel %vm1273_vm8, %v1653_v4, %v1654_v3  ;;  %v1275_v14 = vsel %vm1273_vm8, %v1659_v12, %v1653_v4 }
  0xc4   :  { %1512 = vmatmul.msk.f32.vlgmr.msra.gmra.mxu0 %vm62_vm1, %v1509_v40  ;;  %1513 = vmatmul.msk.f32.vlgmr.msra.gmra.mxu1 %vm62_vm1, %v1509_v40 }
  0xc5   :  { %1068 = vmatpush.msra.mxu0 %v962_v61  ;;  %1088 = vmatpush.msra.mxu1 %v963_v60 }
  0xc6   :  { %1519 = vmatmul.msk.f32.vlgmr.msrb.gmra.mxu2 %vm62_vm1, %v1516_v62  ;;  %1520 = vmatmul.msk.f32.vlgmr.msrb.gmra.mxu3 %vm62_vm1, %v1516_v62  ;;  %v1662_v16 = vpop.permute.xlu1 %1661 }
  0xc7   :  { %1226 = vmatpush.msrb.mxu2 %v1120_v63  ;;  %1246 = vmatpush.msrb.mxu3 %v1121_v0  ;;  %v1268_v5 = vpop.permute.xlu0 %1267  ;;  %v1664_v17 = vunpack.i.h.bf16 %v1662_v16  ;;  %v1663_v18 = vunpack.i.l.bf16 %v1662_v16 }
  0xc8   :  { %v1277_v10 = vsel %vm1273_vm8, %v1654_v3, %v1268_v5 }
  0xc9   :  { %v1278_v19 = vsel %vm1273_vm8, %v1268_v5, %v1663_v18  ;;  %v1279_v20 = vsel %vm1273_vm8, %v1663_v18, %v1664_v17 }
  0xcc   :  { %1517 = vmatmul.msk.f32.vlgmr.msrb.gmra.mxu0 %vm62_vm1, %v1516_v62  ;;  %1518 = vmatmul.msk.f32.vlgmr.msrb.gmra.mxu1 %vm62_vm1, %v1516_v62 }
  0xcd   :  { %1186 = vmatpush.msrb.mxu0 %v1118_v6  ;;  %1206 = vmatpush.msrb.mxu1 %v1119_v7 }
  0xce   :  { %1524 = vmatmul.msk.f32.vlgmr.msra.gmra.mxu2 %vm62_vm1, %v1523_v8  ;;  %1525 = vmatmul.msk.f32.vlgmr.msra.gmra.mxu3 %vm62_vm1, %v1523_v8 }
  0xcf   :  { %1344 = vmatpush.msra.mxu2 %v1276_v11  ;;  %1364 = vmatpush.msra.mxu3 %v1277_v10 }
  0xd4   :  { %1521 = vmatmul.msk.f32.vlgmr.msra.gmra.mxu0 %vm62_vm1, %v1516_v62  ;;  %1522 = vmatmul.msk.f32.vlgmr.msra.gmra.mxu1 %vm62_vm1, %v1516_v62 }
  0xd5   :  { %1324 = vmatpush.msra.mxu1 %v1275_v14  ;;  %1304 = vmatpush.msra.mxu0 %v1274_v15 }
  0xd6   :  { %1528 = vmatmul.msk.f32.vlgmr.msrb.gmra.mxu2 %vm62_vm1, %v1523_v8  ;;  %1529 = vmatmul.msk.f32.vlgmr.msrb.gmra.mxu3 %vm62_vm1, %v1523_v8 }
  0xdc   :  { %1526 = vmatmul.msk.f32.vlgmr.msrb.gmra.mxu0 %vm62_vm1, %v1523_v8  ;;  %1527 = vmatmul.msk.f32.vlgmr.msrb.gmra.mxu1 %vm62_vm1, %v1523_v8 }
  0xdd   :  { %1384 = vmatpush.msrb.mxu0 %v1278_v19  ;;  %1404 = vmatpush.msrb.mxu1 %v1279_v20 }
  0xde   :  { %1533 = vmatmul.msk.f32.vlgmr.msra.gmra.mxu2 %vm62_vm1, %v1530_v21  ;;  %1534 = vmatmul.msk.f32.vlgmr.msra.gmra.mxu3 %vm62_vm1, %v1530_v21 }
  0xe4   :  { %1531 = vmatmul.msk.f32.vlgmr.msra.gmra.mxu0 %vm62_vm1, %v1530_v21  ;;  %1532 = vmatmul.msk.f32.vlgmr.msra.gmra.mxu1 %vm62_vm1, %v1530_v21 }
  0xec   :  { %1535 = vmatmul.msk.f32.vlgmr.msrb.gmra.mxu0 %vm62_vm1, %v1530_v21  ;;  %1536 = vmatmul.msk.f32.vlgmr.msrb.gmra.mxu1 %vm62_vm1, %v1530_v21 }
  0xff   :  { %v123_v22 = vpop.f32.mrf.mxu2  ;;  %v143_v23 = vpop.f32.mrf.mxu3 }
 0x101   :  { %v83_v24 = vpop.f32.mrf.mxu0  ;;  %v103_v25 = vpop.f32.mrf.mxu1 }
 0x109   :  { %v206_v26 = vpop.f32.mrf.mxu2  ;;  %v226_v27 = vpop.f32.mrf.mxu3 }
 0x10a   :  { %v207_v28 = vadd.f32 %v206_v26, %v83_v24  ;;  %v227_v29 = vadd.f32 %v226_v27, %v103_v25  ;;  %v163_v30 = vpop.f32.mrf.mxu0  ;;  %v183_v31 = vpop.f32.mrf.mxu1 }
 0x111   :  { %v286_v32 = vpop.f32.mrf.mxu2  ;;  %v306_v33 = vpop.f32.mrf.mxu3 }
 0x112   :  { %v287_v34 = vadd.f32 %v286_v32, %v163_v30  ;;  %v307_v35 = vadd.f32 %v306_v33, %v183_v31  ;;  %v246_v36 = vpop.f32.mrf.mxu0  ;;  %v266_v37 = vpop.f32.mrf.mxu1 }
 0x113   :  { %v247_v38 = vadd.f32 %v246_v36, %v123_v22  ;;  %v267_v39 = vadd.f32 %v266_v37, %v143_v23 }
 0x119   :  { %v398_v40 = vpop.f32.mrf.mxu2  ;;  %v418_v41 = vpop.f32.mrf.mxu3 }
 0x11a   :  { %v358_v42 = vpop.f32.mrf.mxu0  ;;  %v378_v43 = vpop.f32.mrf.mxu1  ;;  %v463_v8 = vadd.f32 %v398_v40, %v247_v38  ;;  %v464_v9 = vadd.f32 %v418_v41, %v267_v39 }
 0x11b   :  { %v461_v10 = vadd.f32 %v358_v42, %v207_v28  ;;  %v462_v11 = vadd.f32 %v378_v43, %v227_v29  ;;  %v24_v28 = vld [vmem:[%s1911_s2] sm:$0x3f] }
 0x11c   :  { %v1418_v41 = vperm.slane %v24_v28, 2  ;;  %v1419_v42 = vperm.slane %v24_v28, 3 }
 0x121   :  { %v516_v44 = vpop.f32.mrf.mxu2  ;;  %v536_v45 = vpop.f32.mrf.mxu3 }
 0x122   :  { %v438_v46 = vpop.f32.mrf.mxu0  ;;  %v458_v47 = vpop.f32.mrf.mxu1  ;;  %v619_v14 = vadd.f32 %v516_v44, %v461_v10  ;;  %v620_v15 = vadd.f32 %v536_v45, %v462_v11  ;;  %v1416_v45 = vperm.slane %v24_v28, 0 }
 0x123   :  { %v465_v26 = vadd.f32 %v438_v46, %v287_v34  ;;  %v466_v27 = vadd.f32 %v458_v47, %v307_v35  ;;  %v1417_v46 = vperm.slane %v24_v28, 1 }
 0x129   :  { %v596_v48 = vpop.f32.mrf.mxu2  ;;  %v616_v49 = vpop.f32.mrf.mxu3 }
 0x12a   :  { %v556_v50 = vpop.f32.mrf.mxu0  ;;  %v576_v51 = vpop.f32.mrf.mxu1  ;;  %v623_v33 = vadd.f32 %v596_v48, %v465_v26  ;;  %v624_v36 = vadd.f32 %v616_v49, %v466_v27 }
 0x12b   :  { %v621_v12 = vadd.f32 %v556_v50, %v463_v8  ;;  %v622_v13 = vadd.f32 %v576_v51, %v464_v9 }
 0x131   :  { %v714_v52 = vpop.f32.mrf.mxu2  ;;  %v734_v53 = vpop.f32.mrf.mxu3 }
 0x132   :  { %v674_v54 = vpop.f32.mrf.mxu0  ;;  %v694_v55 = vpop.f32.mrf.mxu1  ;;  %v779_v18 = vadd.f32 %v714_v52, %v621_v12  ;;  %v780_v19 = vadd.f32 %v734_v53, %v622_v13 }
 0x133   :  { %v777_v22 = vadd.f32 %v674_v54, %v619_v14  ;;  %v778_v23 = vadd.f32 %v694_v55, %v620_v15 }
 0x139   :  { %v832_v56 = vpop.f32.mrf.mxu2  ;;  %v852_v57 = vpop.f32.mrf.mxu3 }
 0x13a   :  { %v754_v58 = vpop.f32.mrf.mxu0  ;;  %v774_v59 = vpop.f32.mrf.mxu1  ;;  %v935_v30 = vadd.f32 %v832_v56, %v777_v22  ;;  %v936_v31 = vadd.f32 %v852_v57, %v778_v23 }
 0x13b   :  { %v781_v47 = vadd.f32 %v754_v58, %v623_v33  ;;  %v782_v54 = vadd.f32 %v774_v59, %v624_v36 }
 0x141   :  { %v912_v60 = vpop.f32.mrf.mxu2  ;;  %v1879_v61 = vpop.f32.mrf.mxu3 }
 0x142   :  { %v872_v62 = vpop.f32.mrf.mxu0  ;;  %v892_v63 = vpop.f32.mrf.mxu1  ;;  %v939_v55 = vadd.f32 %v912_v60, %v781_v47 }
 0x143   :  { %v937_v24 = vadd.f32 %v872_v62, %v779_v18  ;;  %v938_v25 = vadd.f32 %v892_v63, %v780_v19  ;;  %v940_v62 = vadd.f32 %v1879_v61, %v782_v54  ;;  %v1420_v61 = vperm.slane %v24_v28, 4 }
 0x149   :  { %v1030_v0 = vpop.f32.mrf.mxu2  ;;  %v1050_v1 = vpop.f32.mrf.mxu3 }
 0x14a   :  { %v990_v2 = vpop.f32.mrf.mxu0  ;;  %v1010_v3 = vpop.f32.mrf.mxu1  ;;  %v1095_v29 = vadd.f32 %v1030_v0, %v937_v24  ;;  %v1096_v32 = vadd.f32 %v1050_v1, %v938_v25 }
 0x14b   :  { %v1093_v37 = vadd.f32 %v990_v2, %v935_v30  ;;  %v1094_v38 = vadd.f32 %v1010_v3, %v936_v31 }
 0x151   :  { %v1148_v4 = vpop.f32.mrf.mxu2  ;;  %v1168_v5 = vpop.f32.mrf.mxu3 }
 0x152   :  { %v1070_v6 = vpop.f32.mrf.mxu0  ;;  %v1090_v7 = vpop.f32.mrf.mxu1  ;;  %v1251_v43 = vadd.f32 %v1148_v4, %v1093_v37  ;;  %v1252_v44 = vadd.f32 %v1168_v5, %v1094_v38  ;;  %v1421_v4 = vperm.slane %v24_v28, 5 }
 0x153   :  { %v1097_v1 = vadd.f32 %v1070_v6, %v939_v55  ;;  %v1098_v58 = vadd.f32 %v1090_v7, %v940_v62 }
 0x159   :  { %v1228_v16 = vpop.f32.mrf.mxu2  ;;  %v1248_v17 = vpop.f32.mrf.mxu3 }
 0x15a   :  { %v1188_v20 = vpop.f32.mrf.mxu0  ;;  %v1208_v21 = vpop.f32.mrf.mxu1  ;;  %v1255_v60 = vadd.f32 %v1228_v16, %v1097_v1  ;;  %v1256_v5 = vadd.f32 %v1248_v17, %v1098_v58 }
 0x15b   :  { %v1253_v39 = vadd.f32 %v1188_v20, %v1095_v29  ;;  %v1254_v40 = vadd.f32 %v1208_v21, %v1096_v32 }
 0x161   :  { %v1346_v34 = vpop.f32.mrf.mxu2  ;;  %v1366_v35 = vpop.f32.mrf.mxu3 }
 0x162   :  { %v1411_v50 = vadd.f32 %v1346_v34, %v1253_v39  ;;  %v1412_v51 = vadd.f32 %v1366_v35, %v1254_v40  ;;  %v1306_v52 = vpop.f32.mrf.mxu0  ;;  %v1326_v53 = vpop.f32.mrf.mxu1 }
 0x163   :  { %v1409_v48 = vadd.f32 %v1306_v52, %v1251_v43  ;;  %v1410_v49 = vadd.f32 %v1326_v53, %v1252_v44 }
 0x164   :  { %v1430_v56 = vmul.f32 %v1418_v41, %v1411_v50  ;;  %v1431_v57 = vmul.f32 %v1419_v42, %v1412_v51 }
 0x165   :  { %v1428_v63 = vmul.f32 %v1416_v45, %v1409_v48  ;;  %v1429_v0 = vmul.f32 %v1417_v46, %v1410_v49 }
 0x166   :  { %1436 = vst [vmem:[%s1912_s3 + $0x10] sm:$0xff] %v1430_v56  ;;  %v1451_v6 = vmul.f32 %v1430_v56, %v1430_v56  ;;  %v1452_v9 = vmul.f32 %v1431_v57, %v1431_v57 }
 0x167   :  { %1437 = vst [vmem:[%s1912_s3 + $0x18] sm:$0xff] %v1431_v57  ;;  %v1449_v59 = vmul.f32 %v1428_v63, %v1428_v63  ;;  %v1440_v2 = vadd.f32 %v1429_v0, %v1428_v63  ;;  %v1450_v3 = vmul.f32 %v1429_v0, %v1429_v0 }
 0x168   :  { %1434 = vst [vmem:[%s1912_s3] sm:$0xff] %v1428_v63 }
 0x169   :  { %1435 = vst [vmem:[%s1912_s3 + $0x8] sm:$0xff] %v1429_v0  ;;  %v1455_v7 = vadd.f32 %v1450_v3, %v1449_v59  ;;  %v1441_v8 = vadd.f32 %v1440_v2, %v1430_v56 }
 0x16a   :  { %v1386_v10 = vpop.f32.mrf.mxu0  ;;  %v1406_v11 = vpop.f32.mrf.mxu1 }
 0x16b   :  { %v1413_v12 = vadd.f32 %v1386_v10, %v1255_v60  ;;  %v1414_v13 = vadd.f32 %v1406_v11, %v1256_v5  ;;  %v1442_v14 = vadd.f32 %v1441_v8, %v1431_v57  ;;  %v1456_v15 = vadd.f32 %v1455_v7, %v1451_v6 }
 0x16d   :  { %v1432_v16 = vmul.f32 %v1420_v61, %v1413_v12  ;;  %v1433_v18 = vmul.f32 %v1421_v4, %v1414_v13  ;;  %v1457_v19 = vadd.f32 %v1456_v15, %v1452_v9 }
 0x16f   :  { %1438 = vst [vmem:[%s1912_s3 + $0x20] sm:$0xff] %v1432_v16  ;;  %v1443_v17 = vadd.f32 %v1442_v14, %v1432_v16  ;;  %v1453_v20 = vmul.f32 %v1432_v16, %v1432_v16  ;;  %v1454_v22 = vmul.f32 %v1433_v18, %v1433_v18 }
 0x170   :  { %1439 = vst [vmem:[%s1912_s3 + $0x28] sm:$0xff] %v1433_v18 }
 0x171   :  { %v1444_v21 = vadd.f32 %v1443_v17, %v1433_v18  ;;  %v1458_v23 = vadd.f32 %v1457_v19, %v1453_v20 }
 0x173   :  { %1445 = vadd.xlane.f32.xlu2 %v1444_v21  ;;  %v1459_v24 = vadd.f32 %v1458_v23, %v1454_v22 }
 0x175   :  { %1460 = vadd.xlane.f32.xlu0 %v1459_v24 }
 0x1e6   :  { %v1446_v25 = vpop.xlane.xlu2 %1445 }
 0x1e7   :  { %1448 = vst.msk [vmem:[%s1913_s4] sm:$0xff] %vm1447_vm9, %v1446_v25 }
 0x1e8   :  { %v1461_v26 = vpop.xlane.xlu0 %1460 }
 0x1e9   :  { %1462 = vst.msk [vmem:[%s1914_s5] sm:$0xff] %vm1447_vm9, %v1461_v26 }

// kernel: decoder_block_forward.6
= control target key start
LH: loop header
LB: loop body
LE: loop exit
PB: predicated region body
PF: predicated region fallthrough
CT: control target
= control target key end

     0   :  { %s1665_s26 = smov 127   ;;  %s1666_s27 = smov 126   ;;  %vm49_vm0 = vcmask 1039360   ;;  %vm62_vm1 = vcmask 64512   ;;  %vm325_vm2 = vcmask 1031168   ;;  %vm483_vm3 = vcmask 900096   ;;  %s1909_s1 = inlined_call_operand.vmem [shape: f32[8,896], index: 1, kind: input, shape index: {}]   ;;  %s1910_s0 = inlined_call_operand.vmem [shape: f32[9,8,8], index: 0, kind: input, shape index: {}]   ;;  %s1911_s2 = inlined_call_operand.vmem [shape: f32[1,768], index: 2, kind: input, shape index: {}]   ;;  %s1912_s3 = inlined_call_operand.vmem [shape: f32[8,768], index: 3, kind: output, shape index: {0}]   ;;  %s1913_s4 = inlined_call_operand.vmem [shape: f32[8,1], index: 4, kind: output, shape index: {1}]   ;;  %s1914_s5 = inlined_call_operand.vmem [shape: f32[8,1], index: 5, kind: output, shape index: {2}]  }
   0x1   :  { %v1706_v0 = vld [vmem:[%s1909_s1 + $0x20] sm:$0xff]  ;;  %v1711_v1 = vld [vmem:[%s1909_s1 + $0x28] sm:$0xff]  ;;  %v1716_v2 = vld [vmem:[%s1909_s1 + $0x10] sm:$0xff]  ;;  %s1667_s9 = smov 110   ;;  %s1668_s10 = smov 109   ;;  %vm641_vm4 = vcmask 891904  }
   0x2   :  { %v1555_v3 = vpack.i.bf16 %v1711_v1, %v1706_v0  ;;  %v1723_v4 = vld [vmem:[%s1909_s1 + $0x18] sm:$0xff]  ;;  %v17_v6 = vld [vmem:[%s1909_s1] sm:$0xff]  ;;  %v18_v7 = vld [vmem:[%s1909_s1 + $0x8] sm:$0xff]  ;;  %v1580_v10 = vpack.i.bf16 %v1706_v0, %v1716_v2  ;;  %s1670_s11 = smov 92   ;;  %s1671_s12 = smov 91   ;;  %vm799_vm5 = vcmask 883712  }
   0x3   :  { %v1545_v5 = vpack.i.bf16 %v1723_v4, %v1716_v2  ;;  %v23_v8 = vld [vmem:[%s1909_s1 + $0x30] sm:$0xff]  ;;  %v1550_v9 = vpack.i.bf16 %v18_v7, %v17_v6  ;;  %v1585_v11 = vpack.i.bf16 %v1723_v4, %v1711_v1  ;;  %s1669_s1 = smov 108   ;;  %s1672_s13 = smov 90   ;;  %v1475_v20 = vld [vmem:[%s1910_s0 + $0x8] sm:$0xff]  ;;  %v25_v35 = vld [vmem:[%s1910_s0] sm:$0xff]  ;;  %vm957_vm6 = vcmask 752640  }
   0x4   :  { %1556 = vrot.lane.b32.xlu1 %v1555_v3, %s1665_s26  ;;  %v1660_v12 = vpack.i.bf16 %v23_v8, %v1711_v1  ;;  %v1488_v58 = vld [vmem:[%s1910_s0 + $0x10] sm:$0xff]  ;;  %vm1115_vm7 = vcmask 744448   ;;  %vm1273_vm8 = vcmask 736256   ;;  %vm1447_vm9 = vcmask 7168  }
   0x5   :  { %1546 = vrot.lane.b32.xlu0 %v1545_v5, %s1665_s26  ;;  %1561 = vrot.lane.b32.xlu2 %v1545_v5, %s1666_s27 }
   0xc   :  { %47 = vrot.lane.b32.xlu1 %v23_v8, %s1665_s26 }
   0xd   :  { %1551 = vrot.lane.b32.xlu0 %v1550_v9, %s1665_s26  ;;  %1566 = vrot.lane.b32.xlu2 %v1550_v9, %s1666_s27 }
  0x14   :  { %1576 = vrot.lane.b32.xlu1 %v1550_v9, %s1667_s9 }
  0x15   :  { %1571 = vrot.lane.b32.xlu0 %v1555_v3, %s1666_s27  ;;  %1581 = vrot.lane.b32.xlu2 %v1580_v10, %s1667_s9 }
  0x1c   :  { %1586 = vrot.lane.b32.xlu1 %v1585_v11, %s1667_s9 }
  0x1d   :  { %323 = vrot.lane.b32.xlu0 %v23_v8, %s1666_s27  ;;  %481 = vrot.lane.b32.xlu2 %v23_v8, %s1667_s9 }
  0x24   :  { %1596 = vrot.lane.b32.xlu1 %v1550_v9, %s1668_s10 }
  0x25   :  { %1591 = vrot.lane.b32.xlu0 %v1545_v5, %s1668_s10  ;;  %1601 = vrot.lane.b32.xlu2 %v1555_v3, %s1668_s10 }
  0x2c   :  { %1611 = vrot.lane.b32.xlu1 %v1580_v10, %s1669_s1 }
  0x2d   :  { %1606 = vrot.lane.b32.xlu0 %v1550_v9, %s1669_s1  ;;  %639 = vrot.lane.b32.xlu2 %v23_v8, %s1668_s10 }
  0x34   :  { %797 = vrot.lane.b32.xlu1 %v23_v8, %s1669_s1 }
  0x35   :  { %1616 = vrot.lane.b32.xlu0 %v1585_v11, %s1669_s1  ;;  %1621 = vrot.lane.b32.xlu2 %v1545_v5, %s1670_s11 }
  0x3c   :  { %1631 = vrot.lane.b32.xlu1 %v1555_v3, %s1670_s11 }
  0x3d   :  { %1626 = vrot.lane.b32.xlu0 %v1550_v9, %s1670_s11  ;;  %1636 = vrot.lane.b32.xlu2 %v1550_v9, %s1671_s12 }
  0x44   :  { %955 = vrot.lane.b32.xlu1 %v23_v8, %s1670_s11 }
  0x45   :  { %1641 = vrot.lane.b32.xlu0 %v1580_v10, %s1671_s12  ;;  %1646 = vrot.lane.b32.xlu2 %v1585_v11, %s1671_s12 }
  0x4c   :  { %1651 = vrot.lane.b32.xlu1 %v1545_v5, %s1672_s13 }
  0x4d   :  { %1113 = vrot.lane.b32.xlu0 %v23_v8, %s1671_s12  ;;  %1656 = vrot.lane.b32.xlu2 %v1550_v9, %s1672_s13 }
  0x54   :  { %1661 = vrot.lane.b32.xlu1 %v1660_v12, %s1672_s13 }
  0x55   :  { %1267 = vrot.lane.b32.xlu0 %v1706_v0, %s1672_s13 }
  0x5f   :  { %v1562_v13 = vpop.permute.xlu2 %1561 }
  0x60   :  { %v1564_v28 = vunpack.i.h.bf16 %v1562_v13  ;;  %v1563_v29 = vunpack.i.l.bf16 %v1562_v13 }
  0x62   :  { %v328_v36 = vsel %vm325_vm2, %v1563_v29, %v1564_v28 }
  0x67   :  { %v1567_v17 = vpop.permute.xlu2 %1566 }
  0x68   :  { %v1569_v37 = vunpack.i.h.bf16 %v1567_v17  ;;  %v1568_v38 = vunpack.i.l.bf16 %v1567_v17 }
  0x6a   :  { %v327_v45 = vsel %vm325_vm2, %v1569_v37, %v1563_v29  ;;  %v326_v47 = vsel %vm325_vm2, %v1568_v38, %v1569_v37  ;;  %v1502_v29 = vld [vmem:[%s1910_s0 + $0x20] sm:$0xff] }
  0x6f   :  { %v1751_v30 = vpop.permute.xlu2 %1581 }
  0x70   :  { %v1583_v44 = vunpack.i.l.bf16 %v1751_v30  ;;  %v1584_v54 = vunpack.i.h.bf16 %v1751_v30 }
  0x76   :  { %v1557_v14 = vpop.permute.xlu1 %1556 }
  0x77   :  { %v1558_v15 = vunpack.i.l.bf16 %v1557_v14  ;;  %v1547_v16 = vpop.permute.xlu0 %1546  ;;  %v1559_v23 = vunpack.i.h.bf16 %v1557_v14  ;;  %v482_v48 = vpop.permute.xlu2 %481 }
  0x78   :  { %v1549_v18 = vunpack.i.h.bf16 %v1547_v16  ;;  %v1548_v19 = vunpack.i.l.bf16 %v1547_v16 }
  0x79   :  { %v54_v33 = vsel %vm49_vm0, %v1558_v15, %v1559_v23 }
  0x7a   :  { %v52_v21 = vsel %vm49_vm0, %v1548_v19, %v1549_v18  ;;  %v53_v22 = vsel %vm49_vm0, %v1549_v18, %v1558_v15 }
  0x7b   :  { %121 = vmatpush.msra.mxu2 %v52_v21  ;;  %141 = vmatpush.msra.mxu3 %v53_v22 }
  0x7c   :  { %1478 = vmatmul.msk.f32.vlgmr.msra.gmra.mxu2 %vm62_vm1, %v1475_v20  ;;  %1479 = vmatmul.msk.f32.vlgmr.msra.gmra.mxu3 %vm62_vm1, %v1475_v20 }
  0x7d   :  { %204 = vmatpush.msrb.mxu2 %v17_v6  ;;  %224 = vmatpush.msrb.mxu3 %v18_v7  ;;  %v1495_v6 = vld [vmem:[%s1910_s0 + $0x18] sm:$0xff] }
  0x7e   :  { %v48_v24 = vpop.permute.xlu1 %47 }
  0x7f   :  { %284 = vmatpush.msra.mxu2 %v1706_v0  ;;  %304 = vmatpush.msra.mxu3 %v1711_v1  ;;  %v1552_v25 = vpop.permute.xlu0 %1551  ;;  %v55_v34 = vsel %vm49_vm0, %v1559_v23, %v48_v24  ;;  %v1602_v61 = vpop.permute.xlu2 %1601 }
  0x80   :  { %v1554_v26 = vunpack.i.h.bf16 %v1552_v25  ;;  %v1553_v27 = vunpack.i.l.bf16 %v1552_v25  ;;  %v1603_v3 = vunpack.i.l.bf16 %v1602_v61  ;;  %v1604_v21 = vunpack.i.h.bf16 %v1602_v61 }
  0x82   :  { %v50_v31 = vsel %vm49_vm0, %v1553_v27, %v1554_v26  ;;  %v51_v32 = vsel %vm49_vm0, %v1554_v26, %v1548_v19 }
  0x83   :  { %81 = vmatpush.msra.mxu0 %v50_v31  ;;  %101 = vmatpush.msra.mxu1 %v51_v32 }
  0x84   :  { %1476 = vmatmul.msk.f32.vlgmr.msra.gmra.mxu0 %vm62_vm1, %v1475_v20  ;;  %1477 = vmatmul.msk.f32.vlgmr.msra.gmra.mxu1 %vm62_vm1, %v1475_v20 }
  0x85   :  { %161 = vmatpush.msrb.mxu0 %v54_v33  ;;  %181 = vmatpush.msrb.mxu1 %v55_v34 }
  0x86   :  { %1482 = vmatmul.msk.f32.vlgmr.msrb.gmra.mxu2 %vm62_vm1, %v25_v35  ;;  %1483 = vmatmul.msk.f32.vlgmr.msrb.gmra.mxu3 %vm62_vm1, %v25_v35  ;;  %v1577_v39 = vpop.permute.xlu1 %1576 }
  0x87   :  { %v1572_v40 = vpop.permute.xlu0 %1571  ;;  %264 = vmatpush.msra.mxu1 %v1723_v4  ;;  %244 = vmatpush.msra.mxu0 %v1716_v2  ;;  %v1579_v42 = vunpack.i.h.bf16 %v1577_v39  ;;  %v1578_v43 = vunpack.i.l.bf16 %v1577_v39  ;;  %v640_v16 = vpop.permute.xlu2 %639 }
  0x88   :  { %v1573_v41 = vunpack.i.l.bf16 %v1572_v40  ;;  %396 = vmatpush.msrb.mxu2 %v328_v36  ;;  %v1574_v51 = vunpack.i.h.bf16 %v1572_v40  ;;  %v647_v27 = vsel %vm641_vm4, %v1604_v21, %v640_v16  ;;  %v1509_v40 = vld [vmem:[%s1910_s0 + $0x28] sm:$0xff] }
  0x89   :  { %v484_v49 = vsel %vm483_vm3, %v1578_v43, %v1579_v42  ;;  %v485_v50 = vsel %vm483_vm3, %v1579_v42, %v1583_v44 }
  0x8a   :  { %v329_v46 = vsel %vm325_vm2, %v1564_v28, %v1573_v41  ;;  %v330_v57 = vsel %vm325_vm2, %v1573_v41, %v1574_v51  ;;  %v646_v28 = vsel %vm641_vm4, %v1603_v3, %v1604_v21  ;;  %v1530_v21 = vld [vmem:[%s1910_s0 + $0x40] sm:$0xff] }
  0x8b   :  { %416 = vmatpush.msrb.mxu3 %v329_v46 }
  0x8c   :  { %1480 = vmatmul.msk.f32.vlgmr.msrb.gmra.mxu0 %vm62_vm1, %v1475_v20  ;;  %1481 = vmatmul.msk.f32.vlgmr.msrb.gmra.mxu1 %vm62_vm1, %v1475_v20 }
  0x8d   :  { %376 = vmatpush.msrb.mxu1 %v327_v45  ;;  %356 = vmatpush.msrb.mxu0 %v326_v47 }
  0x8e   :  { %1486 = vmatmul.msk.f32.vlgmr.msra.gmra.mxu2 %vm62_vm1, %v25_v35  ;;  %1487 = vmatmul.msk.f32.vlgmr.msra.gmra.mxu3 %vm62_vm1, %v25_v35  ;;  %v1587_v52 = vpop.permute.xlu1 %1586 }
  0x8f   :  { %v324_v53 = vpop.permute.xlu0 %323  ;;  %514 = vmatpush.msra.mxu2 %v484_v49  ;;  %534 = vmatpush.msra.mxu3 %v485_v50  ;;  %v1588_v55 = vunpack.i.l.bf16 %v1587_v52  ;;  %v1589_v62 = vunpack.i.h.bf16 %v1587_v52  ;;  %v1622_v26 = vpop.permute.xlu2 %1621 }
  0x90   :  { %v331_v56 = vsel %vm325_vm2, %v1574_v51, %v324_v53  ;;  %v1623_v36 = vunpack.i.l.bf16 %v1622_v26 }
  0x91   :  { %v489_v59 = vsel %vm483_vm3, %v1588_v55, %v482_v48  ;;  %v488_v60 = vsel %vm483_vm3, %v1584_v54, %v1588_v55  ;;  %v486_v4 = vsel %vm483_vm3, %v1583_v44, %v1589_v62  ;;  %v487_v5 = vsel %vm483_vm3, %v1589_v62, %v1584_v54  ;;  %v1516_v62 = vld [vmem:[%s1910_s0 + $0x30] sm:$0xff] }
  0x94   :  { %1484 = vmatmul.msk.f32.vlgmr.msra.gmra.mxu0 %vm62_vm1, %v25_v35  ;;  %1485 = vmatmul.msk.f32.vlgmr.msra.gmra.mxu1 %vm62_vm1, %v25_v35  ;;  %v1624_v35 = vunpack.i.h.bf16 %v1622_v26 }
  0x95   :  { %436 = vmatpush.msra.mxu0 %v330_v57  ;;  %456 = vmatpush.msra.mxu1 %v331_v56 }
  0x96   :  { %1491 = vmatmul.msk.f32.vlgmr.msrb.gmra.mxu2 %vm62_vm1, %v1488_v58  ;;  %1492 = vmatmul.msk.f32.vlgmr.msrb.gmra.mxu3 %vm62_vm1, %v1488_v58  ;;  %v1597_v63 = vpop.permute.xlu1 %1596  ;;  %v960_v42 = vsel %vm957_vm6, %v1623_v36, %v1624_v35 }
  0x97   :  { %594 = vmatpush.msrb.mxu2 %v488_v60  ;;  %v1592_v0 = vpop.permute.xlu0 %1591  ;;  %614 = vmatpush.msrb.mxu3 %v489_v59  ;;  %v1599_v9 = vunpack.i.h.bf16 %v1597_v63  ;;  %v1598_v10 = vunpack.i.l.bf16 %v1597_v63  ;;  %v1637_v41 = vpop.permute.xlu2 %1636 }
  0x98   :  { %v1594_v1 = vunpack.i.h.bf16 %v1592_v0  ;;  %v1593_v2 = vunpack.i.l.bf16 %v1592_v0  ;;  %v1639_v47 = vunpack.i.h.bf16 %v1637_v41  ;;  %v1638_v48 = vunpack.i.l.bf16 %v1637_v41 }
  0x99   :  { %v642_v18 = vsel %vm641_vm4, %v1598_v10, %v1599_v9 }
  0x9a   :  { %v644_v7 = vsel %vm641_vm4, %v1593_v2, %v1594_v1  ;;  %v645_v8 = vsel %vm641_vm4, %v1594_v1, %v1603_v3  ;;  %v643_v17 = vsel %vm641_vm4, %v1599_v9, %v1593_v2  ;;  %v1116_v52 = vsel %vm1115_vm7, %v1638_v48, %v1639_v47 }
  0x9c   :  { %1489 = vmatmul.msk.f32.vlgmr.msrb.gmra.mxu0 %vm62_vm1, %v1488_v58  ;;  %1490 = vmatmul.msk.f32.vlgmr.msrb.gmra.mxu1 %vm62_vm1, %v1488_v58 }
  0x9d   :  { %554 = vmatpush.msrb.mxu0 %v486_v4  ;;  %574 = vmatpush.msrb.mxu1 %v487_v5 }
  0x9e   :  { %1496 = vmatmul.msk.f32.vlgmr.msra.gmra.mxu2 %vm62_vm1, %v1495_v6  ;;  %1497 = vmatmul.msk.f32.vlgmr.msra.gmra.mxu3 %vm62_vm1, %v1495_v6  ;;  %v1612_v11 = vpop.permute.xlu1 %1611 }
  0x9f   :  { %v1607_v12 = vpop.permute.xlu0 %1606  ;;  %712 = vmatpush.msra.mxu2 %v644_v7  ;;  %732 = vmatpush.msra.mxu3 %v645_v8  ;;  %v1613_v15 = vunpack.i.l.bf16 %v1612_v11  ;;  %v1614_v24 = vunpack.i.h.bf16 %v1612_v11  ;;  %v1647_v55 = vpop.permute.xlu2 %1646  ;;  %v1523_v8 = vld [vmem:[%s1910_s0 + $0x38] sm:$0xff] }
  0xa0   :  { %v1609_v13 = vunpack.i.h.bf16 %v1607_v12  ;;  %v1608_v14 = vunpack.i.l.bf16 %v1607_v12  ;;  %v1648_v59 = vunpack.i.l.bf16 %v1647_v55  ;;  %v1649_v2 = vunpack.i.h.bf16 %v1647_v55 }
  0xa2   :  { %v800_v19 = vsel %vm799_vm5, %v1608_v14, %v1609_v13  ;;  %v801_v20 = vsel %vm799_vm5, %v1609_v13, %v1613_v15 }
  0xa4   :  { %1493 = vmatmul.msk.f32.vlgmr.msra.gmra.mxu0 %vm62_vm1, %v1488_v58  ;;  %1494 = vmatmul.msk.f32.vlgmr.msra.gmra.mxu1 %vm62_vm1, %v1488_v58 }
  0xa5   :  { %692 = vmatpush.msra.mxu1 %v643_v17  ;;  %672 = vmatpush.msra.mxu0 %v642_v18 }
  0xa6   :  { %1500 = vmatmul.msk.f32.vlgmr.msrb.gmra.mxu2 %vm62_vm1, %v1495_v6  ;;  %1501 = vmatmul.msk.f32.vlgmr.msrb.gmra.mxu3 %vm62_vm1, %v1495_v6  ;;  %v798_v22 = vpop.permute.xlu1 %797 }
  0xa7   :  { %v1617_v23 = vpop.permute.xlu0 %1616  ;;  %830 = vmatpush.msrb.mxu2 %v800_v19  ;;  %850 = vmatpush.msrb.mxu3 %v801_v20  ;;  %v1657_v9 = vpop.permute.xlu2 %1656 }
  0xa8   :  { %v1618_v25 = vunpack.i.l.bf16 %v1617_v23  ;;  %v1619_v32 = vunpack.i.h.bf16 %v1617_v23  ;;  %v1659_v12 = vunpack.i.h.bf16 %v1657_v9  ;;  %v1658_v13 = vunpack.i.l.bf16 %v1657_v9 }
  0xaa   :  { %v805_v30 = vsel %vm799_vm5, %v1618_v25, %v798_v22  ;;  %v804_v31 = vsel %vm799_vm5, %v1614_v24, %v1618_v25  ;;  %v802_v38 = vsel %vm799_vm5, %v1613_v15, %v1619_v32  ;;  %v803_v39 = vsel %vm799_vm5, %v1619_v32, %v1614_v24 }
  0xab   :  { %v1274_v15 = vsel %vm1273_vm8, %v1658_v13, %v1659_v12 }
  0xac   :  { %1498 = vmatmul.msk.f32.vlgmr.msrb.gmra.mxu0 %vm62_vm1, %v1495_v6  ;;  %1499 = vmatmul.msk.f32.vlgmr.msrb.gmra.mxu1 %vm62_vm1, %v1495_v6 }
  0xad   :  { %752 = vmatpush.msrb.mxu0 %v646_v28  ;;  %772 = vmatpush.msrb.mxu1 %v647_v27 }
  0xae   :  { %1505 = vmatmul.msk.f32.vlgmr.msra.gmra.mxu2 %vm62_vm1, %v1502_v29  ;;  %1506 = vmatmul.msk.f32.vlgmr.msra.gmra.mxu3 %vm62_vm1, %v1502_v29  ;;  %v1632_v33 = vpop.permute.xlu1 %1631 }
  0xaf   :  { %910 = vmatpush.msra.mxu2 %v804_v31  ;;  %930 = vmatpush.msra.mxu3 %v805_v30  ;;  %v1627_v34 = vpop.permute.xlu0 %1626  ;;  %v1633_v37 = vunpack.i.l.bf16 %v1632_v33  ;;  %v1634_v56 = vunpack.i.h.bf16 %v1632_v33 }
  0xb0   :  { %v1629_v44 = vunpack.i.h.bf16 %v1627_v34  ;;  %v1628_v45 = vunpack.i.l.bf16 %v1627_v34 }
  0xb1   :  { %v961_v43 = vsel %vm957_vm6, %v1624_v35, %v1633_v37  ;;  %v962_v61 = vsel %vm957_vm6, %v1633_v37, %v1634_v56 }
  0xb2   :  { %v959_v50 = vsel %vm957_vm6, %v1629_v44, %v1623_v36  ;;  %v958_v51 = vsel %vm957_vm6, %v1628_v45, %v1629_v44 }
  0xb4   :  { %1503 = vmatmul.msk.f32.vlgmr.msra.gmra.mxu0 %vm62_vm1, %v1502_v29  ;;  %1504 = vmatmul.msk.f32.vlgmr.msra.gmra.mxu1 %vm62_vm1, %v1502_v29 }
  0xb5   :  { %870 = vmatpush.msra.mxu0 %v802_v38  ;;  %890 = vmatpush.msra.mxu1 %v803_v39 }
  0xb6   :  { %1510 = vmatmul.msk.f32.vlgmr.msrb.gmra.mxu2 %vm62_vm1, %v1509_v40  ;;  %1511 = vmatmul.msk.f32.vlgmr.msrb.gmra.mxu3 %vm62_vm1, %v1509_v40  ;;  %v956_v54 = vpop.permute.xlu1 %955 }
  0xb7   :  { %1028 = vmatpush.msrb.mxu2 %v960_v42  ;;  %1048 = vmatpush.msrb.mxu3 %v961_v43  ;;  %v1642_v46 = vpop.permute.xlu0 %1641  ;;  %v963_v60 = vsel %vm957_vm6, %v1634_v56, %v956_v54 }
  0xb8   :  { %v1643_v49 = vunpack.i.l.bf16 %v1642_v46  ;;  %v1644_v58 = vunpack.i.h.bf16 %v1642_v46 }
  0xba   :  { %v1117_v53 = vsel %vm1115_vm7, %v1639_v47, %v1643_v49  ;;  %v1120_v63 = vsel %vm1115_vm7, %v1644_v58, %v1648_v59  ;;  %v1118_v6 = vsel %vm1115_vm7, %v1643_v49, %v1649_v2  ;;  %v1119_v7 = vsel %vm1115_vm7, %v1649_v2, %v1644_v58 }
  0xbc   :  { %1507 = vmatmul.msk.f32.vlgmr.msrb.gmra.mxu0 %vm62_vm1, %v1502_v29  ;;  %1508 = vmatmul.msk.f32.vlgmr.msrb.gmra.mxu1 %vm62_vm1, %v1502_v29 }
  0xbd   :  { %1008 = vmatpush.msrb.mxu1 %v959_v50  ;;  %988 = vmatpush.msrb.mxu0 %v958_v51 }
  0xbe   :  { %1514 = vmatmul.msk.f32.vlgmr.msra.gmra.mxu2 %vm62_vm1, %v1509_v40  ;;  %1515 = vmatmul.msk.f32.vlgmr.msra.gmra.mxu3 %vm62_vm1, %v1509_v40  ;;  %v1652_v1 = vpop.permute.xlu1 %1651 }
  0xbf   :  { %1146 = vmatpush.msra.mxu2 %v1116_v52  ;;  %1166 = vmatpush.msra.mxu3 %v1117_v53  ;;  %v1114_v57 = vpop.permute.xlu0 %1113  ;;  %v1654_v3 = vunpack.i.h.bf16 %v1652_v1  ;;  %v1653_v4 = vunpack.i.l.bf16 %v1652_v1 }
  0xc0   :  { %v1121_v0 = vsel %vm1115_vm7, %v1648_v59, %v1114_v57 }
  0xc1   :  { %v1276_v11 = vsel %vm1273_vm8, %v1653_v4, %v1654_v3  ;;  %v1275_v14 = vsel %vm1273_vm8, %v1659_v12, %v1653_v4 }
  0xc4   :  { %1512 = vmatmul.msk.f32.vlgmr.msra.gmra.mxu0 %vm62_vm1, %v1509_v40  ;;  %1513 = vmatmul.msk.f32.vlgmr.msra.gmra.mxu1 %vm62_vm1, %v1509_v40 }
  0xc5   :  { %1068 = vmatpush.msra.mxu0 %v962_v61  ;;  %1088 = vmatpush.msra.mxu1 %v963_v60 }
  0xc6   :  { %1519 = vmatmul.msk.f32.vlgmr.msrb.gmra.mxu2 %vm62_vm1, %v1516_v62  ;;  %1520 = vmatmul.msk.f32.vlgmr.msrb.gmra.mxu3 %vm62_vm1, %v1516_v62  ;;  %v1662_v16 = vpop.permute.xlu1 %1661 }
  0xc7   :  { %1226 = vmatpush.msrb.mxu2 %v1120_v63  ;;  %1246 = vmatpush.msrb.mxu3 %v1121_v0  ;;  %v1268_v5 = vpop.permute.xlu0 %1267  ;;  %v1664_v17 = vunpack.i.h.bf16 %v1662_v16  ;;  %v1663_v18 = vunpack.i.l.bf16 %v1662_v16 }
  0xc8   :  { %v1277_v10 = vsel %vm1273_vm8, %v1654_v3, %v1268_v5 }
  0xc9   :  { %v1278_v19 = vsel %vm1273_vm8, %v1268_v5, %v1663_v18  ;;  %v1279_v20 = vsel %vm1273_vm8, %v1663_v18, %v1664_v17 }
  0xcc   :  { %1517 = vmatmul.msk.f32.vlgmr.msrb.gmra.mxu0 %vm62_vm1, %v1516_v62  ;;  %1518 = vmatmul.msk.f32.vlgmr.msrb.gmra.mxu1 %vm62_vm1, %v1516_v62 }
  0xcd   :  { %1186 = vmatpush.msrb.mxu0 %v1118_v6  ;;  %1206 = vmatpush.msrb.mxu1 %v1119_v7 }
  0xce   :  { %1524 = vmatmul.msk.f32.vlgmr.msra.gmra.mxu2 %vm62_vm1, %v1523_v8  ;;  %1525 = vmatmul.msk.f32.vlgmr.msra.gmra.mxu3 %vm62_vm1, %v1523_v8 }
  0xcf   :  { %1344 = vmatpush.msra.mxu2 %v1276_v11  ;;  %1364 = vmatpush.msra.mxu3 %v1277_v10 }
  0xd4   :  { %1521 = vmatmul.msk.f32.vlgmr.msra.gmra.mxu0 %vm62_vm1, %v1516_v62  ;;  %1522 = vmatmul.msk.f32.vlgmr.msra.gmra.mxu1 %vm62_vm1, %v1516_v62 }
  0xd5   :  { %1324 = vmatpush.msra.mxu1 %v1275_v14  ;;  %1304 = vmatpush.msra.mxu0 %v1274_v15 }
  0xd6   :  { %1528 = vmatmul.msk.f32.vlgmr.msrb.gmra.mxu2 %vm62_vm1, %v1523_v8  ;;  %1529 = vmatmul.msk.f32.vlgmr.msrb.gmra.mxu3 %vm62_vm1, %v1523_v8 }
  0xdc   :  { %1526 = vmatmul.msk.f32.vlgmr.msrb.gmra.mxu0 %vm62_vm1, %v1523_v8  ;;  %1527 = vmatmul.msk.f32.vlgmr.msrb.gmra.mxu1 %vm62_vm1, %v1523_v8 }
  0xdd   :  { %1384 = vmatpush.msrb.mxu0 %v1278_v19  ;;  %1404 = vmatpush.msrb.mxu1 %v1279_v20 }
  0xde   :  { %1533 = vmatmul.msk.f32.vlgmr.msra.gmra.mxu2 %vm62_vm1, %v1530_v21  ;;  %1534 = vmatmul.msk.f32.vlgmr.msra.gmra.mxu3 %vm62_vm1, %v1530_v21 }
  0xe4   :  { %1531 = vmatmul.msk.f32.vlgmr.msra.gmra.mxu0 %vm62_vm1, %v1530_v21  ;;  %1532 = vmatmul.msk.f32.vlgmr.msra.gmra.mxu1 %vm62_vm1, %v1530_v21 }
  0xec   :  { %1535 = vmatmul.msk.f32.vlgmr.msrb.gmra.mxu0 %vm62_vm1, %v1530_v21  ;;  %1536 = vmatmul.msk.f32.vlgmr.msrb.gmra.mxu1 %vm62_vm1, %v1530_v21 }
  0xff   :  { %v123_v22 = vpop.f32.mrf.mxu2  ;;  %v143_v23 = vpop.f32.mrf.mxu3 }
 0x101   :  { %v83_v24 = vpop.f32.mrf.mxu0  ;;  %v103_v25 = vpop.f32.mrf.mxu1 }
 0x109   :  { %v206_v26 = vpop.f32.mrf.mxu2  ;;  %v226_v27 = vpop.f32.mrf.mxu3 }
 0x10a   :  { %v207_v28 = vadd.f32 %v206_v26, %v83_v24  ;;  %v227_v29 = vadd.f32 %v226_v27, %v103_v25  ;;  %v163_v30 = vpop.f32.mrf.mxu0  ;;  %v183_v31 = vpop.f32.mrf.mxu1 }
 0x111   :  { %v286_v32 = vpop.f32.mrf.mxu2  ;;  %v306_v33 = vpop.f32.mrf.mxu3 }
 0x112   :  { %v287_v34 = vadd.f32 %v286_v32, %v163_v30  ;;  %v307_v35 = vadd.f32 %v306_v33, %v183_v31  ;;  %v246_v36 = vpop.f32.mrf.mxu0  ;;  %v266_v37 = vpop.f32.mrf.mxu1 }
 0x113   :  { %v247_v38 = vadd.f32 %v246_v36, %v123_v22  ;;  %v267_v39 = vadd.f32 %v266_v37, %v143_v23 }
 0x119   :  { %v398_v40 = vpop.f32.mrf.mxu2  ;;  %v418_v41 = vpop.f32.mrf.mxu3 }
 0x11a   :  { %v358_v42 = vpop.f32.mrf.mxu0  ;;  %v378_v43 = vpop.f32.mrf.mxu1  ;;  %v463_v8 = vadd.f32 %v398_v40, %v247_v38  ;;  %v464_v9 = vadd.f32 %v418_v41, %v267_v39 }
 0x11b   :  { %v461_v10 = vadd.f32 %v358_v42, %v207_v28  ;;  %v462_v11 = vadd.f32 %v378_v43, %v227_v29  ;;  %v24_v28 = vld [vmem:[%s1911_s2] sm:$0x3f] }
 0x11c   :  { %v1418_v41 = vperm.slane %v24_v28, 2  ;;  %v1419_v42 = vperm.slane %v24_v28, 3 }
 0x121   :  { %v516_v44 = vpop.f32.mrf.mxu2  ;;  %v536_v45 = vpop.f32.mrf.mxu3 }
 0x122   :  { %v438_v46 = vpop.f32.mrf.mxu0  ;;  %v458_v47 = vpop.f32.mrf.mxu1  ;;  %v619_v14 = vadd.f32 %v516_v44, %v461_v10  ;;  %v620_v15 = vadd.f32 %v536_v45, %v462_v11  ;;  %v1416_v45 = vperm.slane %v24_v28, 0 }
 0x123   :  { %v465_v26 = vadd.f32 %v438_v46, %v287_v34  ;;  %v466_v27 = vadd.f32 %v458_v47, %v307_v35  ;;  %v1417_v46 = vperm.slane %v24_v28, 1 }
 0x129   :  { %v596_v48 = vpop.f32.mrf.mxu2  ;;  %v616_v49 = vpop.f32.mrf.mxu3 }
 0x12a   :  { %v556_v50 = vpop.f32.mrf.mxu0  ;;  %v576_v51 = vpop.f32.mrf.mxu1  ;;  %v623_v33 = vadd.f32 %v596_v48, %v465_v26  ;;  %v624_v36 = vadd.f32 %v616_v49, %v466_v27 }
 0x12b   :  { %v621_v12 = vadd.f32 %v556_v50, %v463_v8  ;;  %v622_v13 = vadd.f32 %v576_v51, %v464_v9 }
 0x131   :  { %v714_v52 = vpop.f32.mrf.mxu2  ;;  %v734_v53 = vpop.f32.mrf.mxu3 }
 0x132   :  { %v674_v54 = vpop.f32.mrf.mxu0  ;;  %v694_v55 = vpop.f32.mrf.mxu1  ;;  %v779_v18 = vadd.f32 %v714_v52, %v621_v12  ;;  %v780_v19 = vadd.f32 %v734_v53, %v622_v13 }
 0x133   :  { %v777_v22 = vadd.f32 %v674_v54, %v619_v14  ;;  %v778_v23 = vadd.f32 %v694_v55, %v620_v15 }
 0x139   :  { %v832_v56 = vpop.f32.mrf.mxu2  ;;  %v852_v57 = vpop.f32.mrf.mxu3 }
 0x13a   :  { %v754_v58 = vpop.f32.mrf.mxu0  ;;  %v774_v59 = vpop.f32.mrf.mxu1  ;;  %v935_v30 = vadd.f32 %v832_v56, %v777_v22  ;;  %v936_v31 = vadd.f32 %v852_v57, %v778_v23 }
 0x13b   :  { %v781_v47 = vadd.f32 %v754_v58, %v623_v33  ;;  %v782_v54 = vadd.f32 %v774_v59, %v624_v36 }
 0x141   :  { %v912_v60 = vpop.f32.mrf.mxu2  ;;  %v1879_v61 = vpop.f32.mrf.mxu3 }
 0x142   :  { %v872_v62 = vpop.f32.mrf.mxu0  ;;  %v892_v63 = vpop.f32.mrf.mxu1  ;;  %v939_v55 = vadd.f32 %v912_v60, %v781_v47 }
 0x143   :  { %v937_v24 = vadd.f32 %v872_v62, %v779_v18  ;;  %v938_v25 = vadd.f32 %v892_v63, %v780_v19  ;;  %v940_v62 = vadd.f32 %v1879_v61, %v782_v54  ;;  %v1420_v61 = vperm.slane %v24_v28, 4 }
 0x149   :  { %v1030_v0 = vpop.f32.mrf.mxu2  ;;  %v1050_v1 = vpop.f32.mrf.mxu3 }
 0x14a   :  { %v990_v2 = vpop.f32.mrf.mxu0  ;;  %v1010_v3 = vpop.f32.mrf.mxu1  ;;  %v1095_v29 = vadd.f32 %v1030_v0, %v937_v24  ;;  %v1096_v32 = vadd.f32 %v1050_v1, %v938_v25 }
 0x14b   :  { %v1093_v37 = vadd.f32 %v990_v2, %v935_v30  ;;  %v1094_v38 = vadd.f32 %v1010_v3, %v936_v31 }
 0x151   :  { %v1148_v4 = vpop.f32.mrf.mxu2  ;;  %v1168_v5 = vpop.f32.mrf.mxu3 }
 0x152   :  { %v1070_v6 = vpop.f32.mrf.mxu0  ;;  %v1090_v7 = vpop.f32.mrf.mxu1  ;;  %v1251_v43 = vadd.f32 %v1148_v4, %v1093_v37  ;;  %v1252_v44 = vadd.f32 %v1168_v5, %v1094_v38  ;;  %v1421_v4 = vperm.slane %v24_v28, 5 }
 0x153   :  { %v1097_v1 = vadd.f32 %v1070_v6, %v939_v55  ;;  %v1098_v58 = vadd.f32 %v1090_v7, %v940_v62 }
 0x159   :  { %v1228_v16 = vpop.f32.mrf.mxu2  ;;  %v1248_v17 = vpop.f32.mrf.mxu3 }
 0x15a   :  { %v1188_v20 = vpop.f32.mrf.mxu0  ;;  %v1208_v21 = vpop.f32.mrf.mxu1  ;;  %v1255_v60 = vadd.f32 %v1228_v16, %v1097_v1  ;;  %v1256_v5 = vadd.f32 %v1248_v17, %v1098_v58 }
 0x15b   :  { %v1253_v39 = vadd.f32 %v1188_v20, %v1095_v29  ;;  %v1254_v40 = vadd.f32 %v1208_v21, %v1096_v32 }
 0x161   :  { %v1346_v34 = vpop.f32.mrf.mxu2  ;;  %v1366_v35 = vpop.f32.mrf.mxu3 }
 0x162   :  { %v1411_v50 = vadd.f32 %v1346_v34, %v1253_v39  ;;  %v1412_v51 = vadd.f32 %v1366_v35, %v1254_v40  ;;  %v1306_v52 = vpop.f32.mrf.mxu0  ;;  %v1326_v53 = vpop.f32.mrf.mxu1 }
 0x163   :  { %v1409_v48 = vadd.f32 %v1306_v52, %v1251_v43  ;;  %v1410_v49 = vadd.f32 %v1326_v53, %v1252_v44 }
 0x164   :  { %v1430_v56 = vmul.f32 %v1418_v41, %v1411_v50  ;;  %v1431_v57 = vmul.f32 %v1419_v42, %v1412_v51 }
 0x165   :  { %v1428_v63 = vmul.f32 %v1416_v45, %v1409_v48  ;;  %v1429_v0 = vmul.f32 %v1417_v46, %v1410_v49 }
 0x166   :  { %1436 = vst [vmem:[%s1912_s3 + $0x10] sm:$0xff] %v1430_v56  ;;  %v1451_v6 = vmul.f32 %v1430_v56, %v1430_v56  ;;  %v1452_v9 = vmul.f32 %v1431_v57, %v1431_v57 }
 0x167   :  { %1437 = vst [vmem:[%s1912_s3 + $0x18] sm:$0xff] %v1431_v57  ;;  %v1449_v59 = vmul.f32 %v1428_v63, %v1428_v63  ;;  %v1440_v2 = vadd.f32 %v1429_v0, %v1428_v63  ;;  %v1450_v3 = vmul.f32 %v1429_v0, %v1429_v0 }
 0x168   :  { %1434 = vst [vmem:[%s1912_s3] sm:$0xff] %v1428_v63 }
 0x169   :  { %1435 = vst [vmem:[%s1912_s3 + $0x8] sm:$0xff] %v1429_v0  ;;  %v1455_v7 = vadd.f32 %v1450_v3, %v1449_v59  ;;  %v1441_v8 = vadd.f32 %v1440_v2, %v1430_v56 }
 0x16a   :  { %v1386_v10 = vpop.f32.mrf.mxu0  ;;  %v1406_v11 = vpop.f32.mrf.mxu1 }
 0x16b   :  { %v1413_v12 = vadd.f32 %v1386_v10, %v1255_v60  ;;  %v1414_v13 = vadd.f32 %v1406_v11, %v1256_v5  ;;  %v1442_v14 = vadd.f32 %v1441_v8, %v1431_v57  ;;  %v1456_v15 = vadd.f32 %v1455_v7, %v1451_v6 }
 0x16d   :  { %v1432_v16 = vmul.f32 %v1420_v61, %v1413_v12  ;;  %v1433_v18 = vmul.f32 %v1421_v4, %v1414_v13  ;;  %v1457_v19 = vadd.f32 %v1456_v15, %v1452_v9 }
 0x16f   :  { %1438 = vst [vmem:[%s1912_s3 + $0x20] sm:$0xff] %v1432_v16  ;;  %v1443_v17 = vadd.f32 %v1442_v14, %v1432_v16  ;;  %v1453_v20 = vmul.f32 %v1432_v16, %v1432_v16  ;;  %v1454_v22 = vmul.f32 %v1433_v18, %v1433_v18 }
 0x170   :  { %1439 = vst [vmem:[%s1912_s3 + $0x28] sm:$0xff] %v1433_v18 }
 0x171   :  { %v1444_v21 = vadd.f32 %v1443_v17, %v1433_v18  ;;  %v1458_v23 = vadd.f32 %v1457_v19, %v1453_v20 }
 0x173   :  { %1445 = vadd.xlane.f32.xlu2 %v1444_v21  ;;  %v1459_v24 = vadd.f32 %v1458_v23, %v1454_v22 }
 0x175   :  { %1460 = vadd.xlane.f32.xlu0 %v1459_v24 }
 0x1e6   :  { %v1446_v25 = vpop.xlane.xlu2 %1445 }
 0x1e7   :  { %1448 = vst.msk [vmem:[%s1913_s4] sm:$0xff] %vm1447_vm9, %v1446_v25 }
 0x1e8   :  { %v1461_v26 = vpop.xlane.xlu0 %1460 }
 0x1e9   :  { %1462 = vst.msk [vmem:[%s1914_s5] sm:$0xff] %vm1447_vm9, %v1461_v26 }

</bundles_post_ra>
